<compile_context>
chip_gen: v6e
topology: v6e:2x2x1
jax: 0.10.0
libtpu: 0.0.40
codegen_flags: <defaults>
</compile_context>

<pallas_src>
import functools

import jax
import jax.numpy as jnp
import numpy as np
from jax.experimental import pallas as pl
from jax.experimental.pallas import tpu as pltpu


def _trace_kernel(x_ref, y_ref, tmask_ref, w1_ref, b1_ref, w2_ref, b2_ref,
                  loss_ref, *, W):
    """One grid step == Bs images folded into the lane axis.

    x_ref     : (Cin, Nb)    bf16  input, channels on sublanes / (batch*spatial) on lanes
    y_ref     : (1, Nb)      bf16  target mask (0/1), lane-dense
    tmask_ref : (9, Nb)      f32   per-tap {0,1} border-validity masks (row & col)
    w1_ref    : (9, Ch, Cin) bf16  conv1 weights per tap
    b1_ref    : (Ch, 1)      f32
    w2_ref    : (9, Ch, 1)   f32   conv2 weights per tap
    b2_ref    : (1, 1)       f32
    loss_ref  : (1, 1, 1)    f32   per-step partial BCE sum
    """
    Nb = x_ref.shape[-1]
    taps = [(dy, dx) for dy in (-1, 0, 1) for dx in (-1, 0, 1)]

    x = x_ref[...]                                   # (Cin, Nb) bf16, fed to MXU as-is

    # ---- conv1 ("same" 3x3, Cin->Ch): 9 accumulated MXU dots.  The tap shift is
    #      applied to the f32 dot RESULT via an XLU lane-roll + border mask, so
    #      x never leaves bf16 and no im2col staging is required. ----
    h = None
    for t, (dy, dx) in enumerate(taps):
        d = dy * W + dx
        u = jnp.dot(w1_ref[t], x, preferred_element_type=jnp.float32)   # (Ch, Nb)
        if d != 0:
            # u[:, p] must become u[:, p + d] at valid positions; the roll's
            # wraparound (slab ends / cross-image rows) is zeroed by the mask.
            u = pltpu.roll(u, (-d) % Nb, 1) * tmask_ref[t:t + 1, :]
        h = u if h is None else h + u
    h = jnp.maximum(h + b1_ref[...], 0.0)            # bias + ReLU, lane-dense (Ch, Nb)

    # ---- conv2 ("same" 3x3, Ch->1): h stays in vregs; per tap an XLU roll,
    #      VPU multiply by the per-channel weight, sublane reduce, mask. ----
    z = None
    for t, (dy, dx) in enumerate(taps):
        d = dy * W + dx
        hm = h if d == 0 else pltpu.roll(h, (-d) % Nb, 1)
        s = jnp.sum(hm * w2_ref[t], axis=0, keepdims=True)              # (1, Nb)
        if d != 0:
            s = s * tmask_ref[t:t + 1, :]
        z = s if z is None else z + s
    z = z + b2_ref[...]                              # logits (1, Nb)

    # ---- MaskLoss: numerically stable BCE-with-logits, per-step partial sum ----
    y = y_ref[...].astype(jnp.float32)
    bce = jnp.maximum(z, 0.0) - z * y + jnp.log(1.0 + jnp.exp(-jnp.abs(z)))
    loss_ref[...] = jnp.sum(bce, axis=1, keepdims=True).reshape(1, 1, 1)


def trace_model_loss(x_nchw, mask_nchw, params):
    """Wrapper: NCHW inputs (PyTorch convention) -> scalar loss."""
    w1, b1, w2, b2 = params                          # HWIO conv weights
    B, Cin, H, W = x_nchw.shape
    Ch = w1.shape[-1]
    HW = H * W

    # grid: half-batch per step when possible (v7x: both TCs), else one step.
    S = 2 if (B % 2 == 0 and ((B // 2) * HW) % 128 == 0) else 1
    Bs = B // S
    Nb = Bs * HW                                     # lanes per grid step

    # Layout plumbing (one XLA pass over x): fold batch into the lane axis so
    # every in-kernel op is lane-dense.  Mask reshape is free (dim-1 channel).
    x_cb = jnp.transpose(x_nchw.astype(jnp.bfloat16).reshape(B, Cin, HW),
                         (1, 0, 2)).reshape(Cin, B * HW)
    y = mask_nchw.astype(jnp.bfloat16).reshape(1, B * HW)

    # Per-tap {0,1} validity masks over one step's lane slab (row AND column
    # components — both are load-bearing: rows stop cross-image bleed, columns
    # stop left/right edge bleed; roll wraparound is covered by the same masks).
    taps = [(dy, dx) for dy in (-1, 0, 1) for dx in (-1, 0, 1)]
    pos = np.arange(Nb)
    pin = pos % HW
    ii = pin // W
    jj = pin % W
    tmask_np = np.stack(
        [((ii + dy >= 0) & (ii + dy < H) & (jj + dx >= 0) & (jj + dx < W))
         for dy, dx in taps]).astype(np.float32)     # (9, Nb)
    tmask = jnp.asarray(tmask_np)

    # Weights per tap: w1_t (Ch, Cin) bf16 for the MXU, w2_t (Ch, 1) f32.
    w1_taps = jnp.transpose(w1, (0, 1, 3, 2)).reshape(9, Ch, Cin).astype(jnp.bfloat16)
    b1_col = b1.reshape(Ch, 1).astype(jnp.float32)
    w2_taps = w2.reshape(9, Ch, 1).astype(jnp.float32)
    b2_mat = b2.reshape(1, 1).astype(jnp.float32)

    kernel = functools.partial(_trace_kernel, W=W)

    partials = pl.pallas_call(
        kernel,
        out_shape=jax.ShapeDtypeStruct((S, 1, 1), jnp.float32),
        grid=(S,),
        in_specs=[
            pl.BlockSpec((Cin, Nb), lambda s: (0, s)),
            pl.BlockSpec((1, Nb), lambda s: (0, s)),
            pl.BlockSpec((9, Nb), lambda s: (0, 0)),
            pl.BlockSpec((9, Ch, Cin), lambda s: (0, 0, 0)),
            pl.BlockSpec((Ch, 1), lambda s: (0, 0)),
            pl.BlockSpec((9, Ch, 1), lambda s: (0, 0, 0)),
            pl.BlockSpec((1, 1), lambda s: (0, 0)),
        ],
        out_specs=pl.BlockSpec((1, 1, 1), lambda s: (s, 0, 0)),
        compiler_params=pltpu.CompilerParams(
            dimension_semantics=("parallel",),       # independent batch slabs
            vmem_limit_bytes=32 * 1024 * 1024),
    )(x_cb, y, tmask, w1_taps, b1_col, w2_taps, b2_mat)

    return jnp.sum(partials) / (B * HW)


def reference_loss(x_nchw, mask_nchw, params):
    """Pure-JAX reference of the same forward pass (sanity check)."""
    w1, b1, w2, b2 = params
    x = jnp.transpose(x_nchw, (0, 2, 3, 1)).astype(jnp.float32)
    dn = ('NHWC', 'HWIO', 'NHWC')
    h = jax.lax.conv_general_dilated(x, w1, (1, 1), 'SAME',
                                     dimension_numbers=dn,
                                     precision=jax.lax.Precision.HIGHEST) + b1
    h = jnp.maximum(h, 0.0)
    z = jax.lax.conv_general_dilated(h, w2, (1, 1), 'SAME',
                                     dimension_numbers=dn,
                                     precision=jax.lax.Precision.HIGHEST) + b2
    y = jnp.transpose(mask_nchw, (0, 2, 3, 1)).astype(jnp.float32)
    bce = jnp.maximum(z, 0.0) - z * y + jnp.log1p(jnp.exp(-jnp.abs(z)))
    return jnp.mean(bce)


def init_params(key, cin=4, ch=16):
    k1, k2 = jax.random.split(key)
    w1 = jax.random.normal(k1, (3, 3, cin, ch), jnp.float32) * np.sqrt(2.0 / (9 * cin))
    b1 = jnp.zeros((ch,), jnp.float32)
    w2 = jax.random.normal(k2, (3, 3, ch, 1), jnp.float32) * np.sqrt(2.0 / (9 * ch))
    b2 = jnp.zeros((1,), jnp.float32)
    return w1, b1, w2, b2


if __name__ == "__main__":
    key = jax.random.PRNGKey(0)
    kx, km, kp = jax.random.split(key, 3)

    B, C, H, W = 2, 4, 16, 16
    x = jax.random.normal(kx, (B, C, H, W), jnp.float32)          # NCHW input
    mask = (jax.random.uniform(km, (B, 1, H, W)) > 0.5).astype(jnp.float32)
    params = init_params(kp, cin=C, ch=16)

    loss = trace_model_loss(x, mask, params)
    jax.block_until_ready(loss)

    ref = reference_loss(x, mask, params)
    np.testing.assert_allclose(np.asarray(loss), np.asarray(ref),
                               rtol=2e-2, atol=2e-2)
    print("KERNEL_OK")
</pallas_src>

<mosaic_0001>
module attributes {stable_mosaic.version = 11 : i64} {
  func.func @_trace_kernel(%arg0: i32, %arg1: memref<4x256xbf16, #tpu.memory_space<vmem>>, %arg2: memref<1x256xbf16, #tpu.memory_space<vmem>>, %arg3: memref<9x256xf32, #tpu.memory_space<vmem>>, %arg4: memref<9x16x4xbf16, #tpu.memory_space<vmem>>, %arg5: memref<16x1xf32, #tpu.memory_space<vmem>>, %arg6: memref<9x16x1xf32, #tpu.memory_space<vmem>>, %arg7: memref<1x1xf32, #tpu.memory_space<vmem>>, %arg8: memref<1x1x1xf32, #tpu.memory_space<vmem>>) attributes {dimension_semantics = [#tpu.dimension_semantics<parallel>], iteration_bounds = array<i64: 2>, scalar_prefetch = 0 : i64, scratch_operands = 0 : i64, tpu.core_type = #tpu.core_type<tc>, window_params = [{transform_indices = @transform_0, window_bounds = array<i64: 4, 256>}, {transform_indices = @transform_1, window_bounds = array<i64: 1, 256>}, {pipeline_mode = #tpu.pipeline_mode<synchronous>, transform_indices = @transform_2, window_bounds = array<i64: 9, 256>}, {pipeline_mode = #tpu.pipeline_mode<synchronous>, transform_indices = @transform_3, window_bounds = array<i64: 9, 16, 4>}, {pipeline_mode = #tpu.pipeline_mode<synchronous>, transform_indices = @transform_4, window_bounds = array<i64: 16, 1>}, {pipeline_mode = #tpu.pipeline_mode<synchronous>, transform_indices = @transform_5, window_bounds = array<i64: 9, 16, 1>}, {pipeline_mode = #tpu.pipeline_mode<synchronous>, transform_indices = @transform_6, window_bounds = array<i64: 1, 1>}, {transform_indices = @transform_7, window_bounds = array<i64: 1, 1, 1>}]} {
    %c0 = arith.constant 0 : index
    %c0_0 = arith.constant 0 : index
    %0 = vector.load %arg1[%c0, %c0_0] : memref<4x256xbf16, #tpu.memory_space<vmem>>, vector<4x256xbf16>
    %c0_1 = arith.constant 0 : index
    %c0_2 = arith.constant 0 : index
    %c0_3 = arith.constant 0 : index
    %1 = vector.load %arg4[%c0_1, %c0_2, %c0_3] : memref<9x16x4xbf16, #tpu.memory_space<vmem>>, vector<1x16x4xbf16>
    %2 = vector.shape_cast %1 : vector<1x16x4xbf16> to vector<16x4xbf16>
    %cst = arith.constant dense<0.000000e+00> : vector<16x256xf32>
    %3 = tpu.matmul %2, %0, %cst {dimension_numbers = #tpu.dot_dimension_numbers<[1], [0], [0], [1], [0, 0, 1, 1], [], []>} : vector<16x4xbf16>, vector<4x256xbf16>, vector<16x256xf32> -> vector<16x256xf32>
    %c17_i32 = arith.constant 17 : i32
    %4 = tpu.dynamic_rotate %3 by %c17_i32 dim 1 : vector<16x256xf32>, i32 -> vector<16x256xf32>
    %c0_4 = arith.constant 0 : index
    %c0_5 = arith.constant 0 : index
    %5 = vector.load %arg3[%c0_4, %c0_5] : memref<9x256xf32, #tpu.memory_space<vmem>>, vector<1x256xf32>
    %6 = vector.broadcast %5 : vector<1x256xf32> to vector<16x256xf32>
    %7 = arith.mulf %4, %6 : vector<16x256xf32>
    %c1 = arith.constant 1 : index
    %c0_6 = arith.constant 0 : index
    %c0_7 = arith.constant 0 : index
    %8 = vector.load %arg4[%c1, %c0_6, %c0_7] : memref<9x16x4xbf16, #tpu.memory_space<vmem>>, vector<1x16x4xbf16>
    %9 = vector.shape_cast %8 : vector<1x16x4xbf16> to vector<16x4xbf16>
    %cst_8 = arith.constant dense<0.000000e+00> : vector<16x256xf32>
    %10 = tpu.matmul %9, %0, %cst_8 {dimension_numbers = #tpu.dot_dimension_numbers<[1], [0], [0], [1], [0, 0, 1, 1], [], []>} : vector<16x4xbf16>, vector<4x256xbf16>, vector<16x256xf32> -> vector<16x256xf32>
    %c16_i32 = arith.constant 16 : i32
    %11 = tpu.dynamic_rotate %10 by %c16_i32 dim 1 : vector<16x256xf32>, i32 -> vector<16x256xf32>
    %c1_9 = arith.constant 1 : index
    %c0_10 = arith.constant 0 : index
    %12 = vector.load %arg3[%c1_9, %c0_10] : memref<9x256xf32, #tpu.memory_space<vmem>>, vector<1x256xf32>
    %13 = vector.broadcast %12 : vector<1x256xf32> to vector<16x256xf32>
    %14 = arith.mulf %11, %13 : vector<16x256xf32>
    %15 = arith.addf %7, %14 : vector<16x256xf32>
    %c2 = arith.constant 2 : index
    %c0_11 = arith.constant 0 : index
    %c0_12 = arith.constant 0 : index
    %16 = vector.load %arg4[%c2, %c0_11, %c0_12] : memref<9x16x4xbf16, #tpu.memory_space<vmem>>, vector<1x16x4xbf16>
    %17 = vector.shape_cast %16 : vector<1x16x4xbf16> to vector<16x4xbf16>
    %cst_13 = arith.constant dense<0.000000e+00> : vector<16x256xf32>
    %18 = tpu.matmul %17, %0, %cst_13 {dimension_numbers = #tpu.dot_dimension_numbers<[1], [0], [0], [1], [0, 0, 1, 1], [], []>} : vector<16x4xbf16>, vector<4x256xbf16>, vector<16x256xf32> -> vector<16x256xf32>
    %c15_i32 = arith.constant 15 : i32
    %19 = tpu.dynamic_rotate %18 by %c15_i32 dim 1 : vector<16x256xf32>, i32 -> vector<16x256xf32>
    %c2_14 = arith.constant 2 : index
    %c0_15 = arith.constant 0 : index
    %20 = vector.load %arg3[%c2_14, %c0_15] : memref<9x256xf32, #tpu.memory_space<vmem>>, vector<1x256xf32>
    %21 = vector.broadcast %20 : vector<1x256xf32> to vector<16x256xf32>
    %22 = arith.mulf %19, %21 : vector<16x256xf32>
    %23 = arith.addf %15, %22 : vector<16x256xf32>
    %c3 = arith.constant 3 : index
    %c0_16 = arith.constant 0 : index
    %c0_17 = arith.constant 0 : index
    %24 = vector.load %arg4[%c3, %c0_16, %c0_17] : memref<9x16x4xbf16, #tpu.memory_space<vmem>>, vector<1x16x4xbf16>
    %25 = vector.shape_cast %24 : vector<1x16x4xbf16> to vector<16x4xbf16>
    %cst_18 = arith.constant dense<0.000000e+00> : vector<16x256xf32>
    %26 = tpu.matmul %25, %0, %cst_18 {dimension_numbers = #tpu.dot_dimension_numbers<[1], [0], [0], [1], [0, 0, 1, 1], [], []>} : vector<16x4xbf16>, vector<4x256xbf16>, vector<16x256xf32> -> vector<16x256xf32>
    %c1_i32 = arith.constant 1 : i32
    %27 = tpu.dynamic_rotate %26 by %c1_i32 dim 1 : vector<16x256xf32>, i32 -> vector<16x256xf32>
    %c3_19 = arith.constant 3 : index
    %c0_20 = arith.constant 0 : index
    %28 = vector.load %arg3[%c3_19, %c0_20] : memref<9x256xf32, #tpu.memory_space<vmem>>, vector<1x256xf32>
    %29 = vector.broadcast %28 : vector<1x256xf32> to vector<16x256xf32>
    %30 = arith.mulf %27, %29 : vector<16x256xf32>
    %31 = arith.addf %23, %30 : vector<16x256xf32>
    %c4 = arith.constant 4 : index
    %c0_21 = arith.constant 0 : index
    %c0_22 = arith.constant 0 : index
    %32 = vector.load %arg4[%c4, %c0_21, %c0_22] : memref<9x16x4xbf16, #tpu.memory_space<vmem>>, vector<1x16x4xbf16>
    %33 = vector.shape_cast %32 : vector<1x16x4xbf16> to vector<16x4xbf16>
    %cst_23 = arith.constant dense<0.000000e+00> : vector<16x256xf32>
    %34 = tpu.matmul %33, %0, %cst_23 {dimension_numbers = #tpu.dot_dimension_numbers<[1], [0], [0], [1], [0, 0, 1, 1], [], []>} : vector<16x4xbf16>, vector<4x256xbf16>, vector<16x256xf32> -> vector<16x256xf32>
    %35 = arith.addf %31, %34 : vector<16x256xf32>
    %c5 = arith.constant 5 : index
    %c0_24 = arith.constant 0 : index
    %c0_25 = arith.constant 0 : index
    %36 = vector.load %arg4[%c5, %c0_24, %c0_25] : memref<9x16x4xbf16, #tpu.memory_space<vmem>>, vector<1x16x4xbf16>
    %37 = vector.shape_cast %36 : vector<1x16x4xbf16> to vector<16x4xbf16>
    %cst_26 = arith.constant dense<0.000000e+00> : vector<16x256xf32>
    %38 = tpu.matmul %37, %0, %cst_26 {dimension_numbers = #tpu.dot_dimension_numbers<[1], [0], [0], [1], [0, 0, 1, 1], [], []>} : vector<16x4xbf16>, vector<4x256xbf16>, vector<16x256xf32> -> vector<16x256xf32>
    %c255_i32 = arith.constant 255 : i32
    %39 = tpu.dynamic_rotate %38 by %c255_i32 dim 1 : vector<16x256xf32>, i32 -> vector<16x256xf32>
    %c5_27 = arith.constant 5 : index
    %c0_28 = arith.constant 0 : index
    %40 = vector.load %arg3[%c5_27, %c0_28] : memref<9x256xf32, #tpu.memory_space<vmem>>, vector<1x256xf32>
    %41 = vector.broadcast %40 : vector<1x256xf32> to vector<16x256xf32>
    %42 = arith.mulf %39, %41 : vector<16x256xf32>
    %43 = arith.addf %35, %42 : vector<16x256xf32>
    %c6 = arith.constant 6 : index
    %c0_29 = arith.constant 0 : index
    %c0_30 = arith.constant 0 : index
    %44 = vector.load %arg4[%c6, %c0_29, %c0_30] : memref<9x16x4xbf16, #tpu.memory_space<vmem>>, vector<1x16x4xbf16>
    %45 = vector.shape_cast %44 : vector<1x16x4xbf16> to vector<16x4xbf16>
    %cst_31 = arith.constant dense<0.000000e+00> : vector<16x256xf32>
    %46 = tpu.matmul %45, %0, %cst_31 {dimension_numbers = #tpu.dot_dimension_numbers<[1], [0], [0], [1], [0, 0, 1, 1], [], []>} : vector<16x4xbf16>, vector<4x256xbf16>, vector<16x256xf32> -> vector<16x256xf32>
    %c241_i32 = arith.constant 241 : i32
    %47 = tpu.dynamic_rotate %46 by %c241_i32 dim 1 : vector<16x256xf32>, i32 -> vector<16x256xf32>
    %c6_32 = arith.constant 6 : index
    %c0_33 = arith.constant 0 : index
    %48 = vector.load %arg3[%c6_32, %c0_33] : memref<9x256xf32, #tpu.memory_space<vmem>>, vector<1x256xf32>
    %49 = vector.broadcast %48 : vector<1x256xf32> to vector<16x256xf32>
    %50 = arith.mulf %47, %49 : vector<16x256xf32>
    %51 = arith.addf %43, %50 : vector<16x256xf32>
    %c7 = arith.constant 7 : index
    %c0_34 = arith.constant 0 : index
    %c0_35 = arith.constant 0 : index
    %52 = vector.load %arg4[%c7, %c0_34, %c0_35] : memref<9x16x4xbf16, #tpu.memory_space<vmem>>, vector<1x16x4xbf16>
    %53 = vector.shape_cast %52 : vector<1x16x4xbf16> to vector<16x4xbf16>
    %cst_36 = arith.constant dense<0.000000e+00> : vector<16x256xf32>
    %54 = tpu.matmul %53, %0, %cst_36 {dimension_numbers = #tpu.dot_dimension_numbers<[1], [0], [0], [1], [0, 0, 1, 1], [], []>} : vector<16x4xbf16>, vector<4x256xbf16>, vector<16x256xf32> -> vector<16x256xf32>
    %c240_i32 = arith.constant 240 : i32
    %55 = tpu.dynamic_rotate %54 by %c240_i32 dim 1 : vector<16x256xf32>, i32 -> vector<16x256xf32>
    %c7_37 = arith.constant 7 : index
    %c0_38 = arith.constant 0 : index
    %56 = vector.load %arg3[%c7_37, %c0_38] : memref<9x256xf32, #tpu.memory_space<vmem>>, vector<1x256xf32>
    %57 = vector.broadcast %56 : vector<1x256xf32> to vector<16x256xf32>
    %58 = arith.mulf %55, %57 : vector<16x256xf32>
    %59 = arith.addf %51, %58 : vector<16x256xf32>
    %c8 = arith.constant 8 : index
    %c0_39 = arith.constant 0 : index
    %c0_40 = arith.constant 0 : index
    %60 = vector.load %arg4[%c8, %c0_39, %c0_40] : memref<9x16x4xbf16, #tpu.memory_space<vmem>>, vector<1x16x4xbf16>
    %61 = vector.shape_cast %60 : vector<1x16x4xbf16> to vector<16x4xbf16>
    %cst_41 = arith.constant dense<0.000000e+00> : vector<16x256xf32>
    %62 = tpu.matmul %61, %0, %cst_41 {dimension_numbers = #tpu.dot_dimension_numbers<[1], [0], [0], [1], [0, 0, 1, 1], [], []>} : vector<16x4xbf16>, vector<4x256xbf16>, vector<16x256xf32> -> vector<16x256xf32>
    %c239_i32 = arith.constant 239 : i32
    %63 = tpu.dynamic_rotate %62 by %c239_i32 dim 1 : vector<16x256xf32>, i32 -> vector<16x256xf32>
    %c8_42 = arith.constant 8 : index
    %c0_43 = arith.constant 0 : index
    %64 = vector.load %arg3[%c8_42, %c0_43] : memref<9x256xf32, #tpu.memory_space<vmem>>, vector<1x256xf32>
    %65 = vector.broadcast %64 : vector<1x256xf32> to vector<16x256xf32>
    %66 = arith.mulf %63, %65 : vector<16x256xf32>
    %67 = arith.addf %59, %66 : vector<16x256xf32>
    %c0_44 = arith.constant 0 : index
    %c0_45 = arith.constant 0 : index
    %68 = vector.load %arg5[%c0_44, %c0_45] : memref<16x1xf32, #tpu.memory_space<vmem>>, vector<16x1xf32>
    %69 = vector.broadcast %68 : vector<16x1xf32> to vector<16x256xf32>
    %70 = arith.addf %67, %69 : vector<16x256xf32>
    %cst_46 = arith.constant 0.000000e+00 : f32
    %71 = vector.broadcast %cst_46 : f32 to vector<16x256xf32>
    %72 = arith.maximumf %70, %71 : vector<16x256xf32>
    %c17_i32_47 = arith.constant 17 : i32
    %73 = tpu.dynamic_rotate %72 by %c17_i32_47 dim 1 : vector<16x256xf32>, i32 -> vector<16x256xf32>
    %c0_48 = arith.constant 0 : index
    %c0_49 = arith.constant 0 : index
    %c0_50 = arith.constant 0 : index
    %74 = vector.load %arg6[%c0_48, %c0_49, %c0_50] : memref<9x16x1xf32, #tpu.memory_space<vmem>>, vector<1x16x1xf32>
    %75 = vector.shape_cast %74 : vector<1x16x1xf32> to vector<16x1xf32>
    %76 = vector.broadcast %75 : vector<16x1xf32> to vector<16x256xf32>
    %77 = arith.mulf %73, %76 : vector<16x256xf32>
    %cst_51 = arith.constant dense<0.000000e+00> : vector<256xf32>
    %78 = vector.multi_reduction <add>, %77, %cst_51 [0] : vector<16x256xf32> to vector<256xf32>
    %79 = vector.shape_cast %78 : vector<256xf32> to vector<1x256xf32>
    %c0_52 = arith.constant 0 : index
    %c0_53 = arith.constant 0 : index
    %80 = vector.load %arg3[%c0_52, %c0_53] : memref<9x256xf32, #tpu.memory_space<vmem>>, vector<1x256xf32>
    %81 = arith.mulf %79, %80 : vector<1x256xf32>
    %c16_i32_54 = arith.constant 16 : i32
    %82 = tpu.dynamic_rotate %72 by %c16_i32_54 dim 1 : vector<16x256xf32>, i32 -> vector<16x256xf32>
    %c1_55 = arith.constant 1 : index
    %c0_56 = arith.constant 0 : index
    %c0_57 = arith.constant 0 : index
    %83 = vector.load %arg6[%c1_55, %c0_56, %c0_57] : memref<9x16x1xf32, #tpu.memory_space<vmem>>, vector<1x16x1xf32>
    %84 = vector.shape_cast %83 : vector<1x16x1xf32> to vector<16x1xf32>
    %85 = vector.broadcast %84 : vector<16x1xf32> to vector<16x256xf32>
    %86 = arith.mulf %82, %85 : vector<16x256xf32>
    %cst_58 = arith.constant dense<0.000000e+00> : vector<256xf32>
    %87 = vector.multi_reduction <add>, %86, %cst_58 [0] : vector<16x256xf32> to vector<256xf32>
    %88 = vector.shape_cast %87 : vector<256xf32> to vector<1x256xf32>
    %c1_59 = arith.constant 1 : index
    %c0_60 = arith.constant 0 : index
    %89 = vector.load %arg3[%c1_59, %c0_60] : memref<9x256xf32, #tpu.memory_space<vmem>>, vector<1x256xf32>
    %90 = arith.mulf %88, %89 : vector<1x256xf32>
    %91 = arith.addf %81, %90 : vector<1x256xf32>
    %c15_i32_61 = arith.constant 15 : i32
    %92 = tpu.dynamic_rotate %72 by %c15_i32_61 dim 1 : vector<16x256xf32>, i32 -> vector<16x256xf32>
    %c2_62 = arith.constant 2 : index
    %c0_63 = arith.constant 0 : index
    %c0_64 = arith.constant 0 : index
    %93 = vector.load %arg6[%c2_62, %c0_63, %c0_64] : memref<9x16x1xf32, #tpu.memory_space<vmem>>, vector<1x16x1xf32>
    %94 = vector.shape_cast %93 : vector<1x16x1xf32> to vector<16x1xf32>
    %95 = vector.broadcast %94 : vector<16x1xf32> to vector<16x256xf32>
    %96 = arith.mulf %92, %95 : vector<16x256xf32>
    %cst_65 = arith.constant dense<0.000000e+00> : vector<256xf32>
    %97 = vector.multi_reduction <add>, %96, %cst_65 [0] : vector<16x256xf32> to vector<256xf32>
    %98 = vector.shape_cast %97 : vector<256xf32> to vector<1x256xf32>
    %c2_66 = arith.constant 2 : index
    %c0_67 = arith.constant 0 : index
    %99 = vector.load %arg3[%c2_66, %c0_67] : memref<9x256xf32, #tpu.memory_space<vmem>>, vector<1x256xf32>
    %100 = arith.mulf %98, %99 : vector<1x256xf32>
    %101 = arith.addf %91, %100 : vector<1x256xf32>
    %c1_i32_68 = arith.constant 1 : i32
    %102 = tpu.dynamic_rotate %72 by %c1_i32_68 dim 1 : vector<16x256xf32>, i32 -> vector<16x256xf32>
    %c3_69 = arith.constant 3 : index
    %c0_70 = arith.constant 0 : index
    %c0_71 = arith.constant 0 : index
    %103 = vector.load %arg6[%c3_69, %c0_70, %c0_71] : memref<9x16x1xf32, #tpu.memory_space<vmem>>, vector<1x16x1xf32>
    %104 = vector.shape_cast %103 : vector<1x16x1xf32> to vector<16x1xf32>
    %105 = vector.broadcast %104 : vector<16x1xf32> to vector<16x256xf32>
    %106 = arith.mulf %102, %105 : vector<16x256xf32>
    %cst_72 = arith.constant dense<0.000000e+00> : vector<256xf32>
    %107 = vector.multi_reduction <add>, %106, %cst_72 [0] : vector<16x256xf32> to vector<256xf32>
    %108 = vector.shape_cast %107 : vector<256xf32> to vector<1x256xf32>
    %c3_73 = arith.constant 3 : index
    %c0_74 = arith.constant 0 : index
    %109 = vector.load %arg3[%c3_73, %c0_74] : memref<9x256xf32, #tpu.memory_space<vmem>>, vector<1x256xf32>
    %110 = arith.mulf %108, %109 : vector<1x256xf32>
    %111 = arith.addf %101, %110 : vector<1x256xf32>
    %c4_75 = arith.constant 4 : index
    %c0_76 = arith.constant 0 : index
    %c0_77 = arith.constant 0 : index
    %112 = vector.load %arg6[%c4_75, %c0_76, %c0_77] : memref<9x16x1xf32, #tpu.memory_space<vmem>>, vector<1x16x1xf32>
    %113 = vector.shape_cast %112 : vector<1x16x1xf32> to vector<16x1xf32>
    %114 = vector.broadcast %113 : vector<16x1xf32> to vector<16x256xf32>
    %115 = arith.mulf %72, %114 : vector<16x256xf32>
    %cst_78 = arith.constant dense<0.000000e+00> : vector<256xf32>
    %116 = vector.multi_reduction <add>, %115, %cst_78 [0] : vector<16x256xf32> to vector<256xf32>
    %117 = vector.shape_cast %116 : vector<256xf32> to vector<1x256xf32>
    %118 = arith.addf %111, %117 : vector<1x256xf32>
    %c255_i32_79 = arith.constant 255 : i32
    %119 = tpu.dynamic_rotate %72 by %c255_i32_79 dim 1 : vector<16x256xf32>, i32 -> vector<16x256xf32>
    %c5_80 = arith.constant 5 : index
    %c0_81 = arith.constant 0 : index
    %c0_82 = arith.constant 0 : index
    %120 = vector.load %arg6[%c5_80, %c0_81, %c0_82] : memref<9x16x1xf32, #tpu.memory_space<vmem>>, vector<1x16x1xf32>
    %121 = vector.shape_cast %120 : vector<1x16x1xf32> to vector<16x1xf32>
    %122 = vector.broadcast %121 : vector<16x1xf32> to vector<16x256xf32>
    %123 = arith.mulf %119, %122 : vector<16x256xf32>
    %cst_83 = arith.constant dense<0.000000e+00> : vector<256xf32>
    %124 = vector.multi_reduction <add>, %123, %cst_83 [0] : vector<16x256xf32> to vector<256xf32>
    %125 = vector.shape_cast %124 : vector<256xf32> to vector<1x256xf32>
    %c5_84 = arith.constant 5 : index
    %c0_85 = arith.constant 0 : index
    %126 = vector.load %arg3[%c5_84, %c0_85] : memref<9x256xf32, #tpu.memory_space<vmem>>, vector<1x256xf32>
    %127 = arith.mulf %125, %126 : vector<1x256xf32>
    %128 = arith.addf %118, %127 : vector<1x256xf32>
    %c241_i32_86 = arith.constant 241 : i32
    %129 = tpu.dynamic_rotate %72 by %c241_i32_86 dim 1 : vector<16x256xf32>, i32 -> vector<16x256xf32>
    %c6_87 = arith.constant 6 : index
    %c0_88 = arith.constant 0 : index
    %c0_89 = arith.constant 0 : index
    %130 = vector.load %arg6[%c6_87, %c0_88, %c0_89] : memref<9x16x1xf32, #tpu.memory_space<vmem>>, vector<1x16x1xf32>
    %131 = vector.shape_cast %130 : vector<1x16x1xf32> to vector<16x1xf32>
    %132 = vector.broadcast %131 : vector<16x1xf32> to vector<16x256xf32>
    %133 = arith.mulf %129, %132 : vector<16x256xf32>
    %cst_90 = arith.constant dense<0.000000e+00> : vector<256xf32>
    %134 = vector.multi_reduction <add>, %133, %cst_90 [0] : vector<16x256xf32> to vector<256xf32>
    %135 = vector.shape_cast %134 : vector<256xf32> to vector<1x256xf32>
    %c6_91 = arith.constant 6 : index
    %c0_92 = arith.constant 0 : index
    %136 = vector.load %arg3[%c6_91, %c0_92] : memref<9x256xf32, #tpu.memory_space<vmem>>, vector<1x256xf32>
    %137 = arith.mulf %135, %136 : vector<1x256xf32>
    %138 = arith.addf %128, %137 : vector<1x256xf32>
    %c240_i32_93 = arith.constant 240 : i32
    %139 = tpu.dynamic_rotate %72 by %c240_i32_93 dim 1 : vector<16x256xf32>, i32 -> vector<16x256xf32>
    %c7_94 = arith.constant 7 : index
    %c0_95 = arith.constant 0 : index
    %c0_96 = arith.constant 0 : index
    %140 = vector.load %arg6[%c7_94, %c0_95, %c0_96] : memref<9x16x1xf32, #tpu.memory_space<vmem>>, vector<1x16x1xf32>
    %141 = vector.shape_cast %140 : vector<1x16x1xf32> to vector<16x1xf32>
    %142 = vector.broadcast %141 : vector<16x1xf32> to vector<16x256xf32>
    %143 = arith.mulf %139, %142 : vector<16x256xf32>
    %cst_97 = arith.constant dense<0.000000e+00> : vector<256xf32>
    %144 = vector.multi_reduction <add>, %143, %cst_97 [0] : vector<16x256xf32> to vector<256xf32>
    %145 = vector.shape_cast %144 : vector<256xf32> to vector<1x256xf32>
    %c7_98 = arith.constant 7 : index
    %c0_99 = arith.constant 0 : index
    %146 = vector.load %arg3[%c7_98, %c0_99] : memref<9x256xf32, #tpu.memory_space<vmem>>, vector<1x256xf32>
    %147 = arith.mulf %145, %146 : vector<1x256xf32>
    %148 = arith.addf %138, %147 : vector<1x256xf32>
    %c239_i32_100 = arith.constant 239 : i32
    %149 = tpu.dynamic_rotate %72 by %c239_i32_100 dim 1 : vector<16x256xf32>, i32 -> vector<16x256xf32>
    %c8_101 = arith.constant 8 : index
    %c0_102 = arith.constant 0 : index
    %c0_103 = arith.constant 0 : index
    %150 = vector.load %arg6[%c8_101, %c0_102, %c0_103] : memref<9x16x1xf32, #tpu.memory_space<vmem>>, vector<1x16x1xf32>
    %151 = vector.shape_cast %150 : vector<1x16x1xf32> to vector<16x1xf32>
    %152 = vector.broadcast %151 : vector<16x1xf32> to vector<16x256xf32>
    %153 = arith.mulf %149, %152 : vector<16x256xf32>
    %cst_104 = arith.constant dense<0.000000e+00> : vector<256xf32>
    %154 = vector.multi_reduction <add>, %153, %cst_104 [0] : vector<16x256xf32> to vector<256xf32>
    %155 = vector.shape_cast %154 : vector<256xf32> to vector<1x256xf32>
    %c8_105 = arith.constant 8 : index
    %c0_106 = arith.constant 0 : index
    %156 = vector.load %arg3[%c8_105, %c0_106] : memref<9x256xf32, #tpu.memory_space<vmem>>, vector<1x256xf32>
    %157 = arith.mulf %155, %156 : vector<1x256xf32>
    %158 = arith.addf %148, %157 : vector<1x256xf32>
    %c0_107 = arith.constant 0 : index
    %c0_108 = arith.constant 0 : index
    %159 = vector.load %arg7[%c0_107, %c0_108] : memref<1x1xf32, #tpu.memory_space<vmem>>, vector<1x1xf32>
    %160 = vector.broadcast %159 : vector<1x1xf32> to vector<1x256xf32>
    %161 = arith.addf %158, %160 : vector<1x256xf32>
    %c0_109 = arith.constant 0 : index
    %c0_110 = arith.constant 0 : index
    %162 = vector.load %arg2[%c0_109, %c0_110] : memref<1x256xbf16, #tpu.memory_space<vmem>>, vector<1x256xbf16>
    %163 = arith.extf %162 : vector<1x256xbf16> to vector<1x256xf32>
    %cst_111 = arith.constant 0.000000e+00 : f32
    %164 = vector.broadcast %cst_111 : f32 to vector<1x256xf32>
    %165 = arith.maximumf %161, %164 : vector<1x256xf32>
    %166 = arith.mulf %161, %163 : vector<1x256xf32>
    %167 = arith.subf %165, %166 : vector<1x256xf32>
    %168 = math.absf %161 : vector<1x256xf32>
    %cst_112 = arith.constant 0.000000e+00 : f32
    %169 = vector.broadcast %cst_112 : f32 to vector<1x256xf32>
    %170 = arith.subf %169, %168 : vector<1x256xf32>
    %171 = math.exp %170 : vector<1x256xf32>
    %cst_113 = arith.constant 1.000000e+00 : f32
    %172 = vector.broadcast %cst_113 : f32 to vector<1x256xf32>
    %173 = arith.addf %172, %171 : vector<1x256xf32>
    %174 = math.log %173 : vector<1x256xf32>
    %175 = arith.addf %167, %174 : vector<1x256xf32>
    %cst_114 = arith.constant dense<0.000000e+00> : vector<1xf32>
    %176 = vector.multi_reduction <add>, %175, %cst_114 [1] : vector<1x256xf32> to vector<1xf32>
    %177 = vector.shape_cast %176 : vector<1xf32> to vector<1x1xf32>
    %178 = vector.shape_cast %177 : vector<1x1xf32> to vector<1x1x1xf32>
    %c0_115 = arith.constant 0 : index
    %c0_116 = arith.constant 0 : index
    %c0_117 = arith.constant 0 : index
    %179 = vector.load %arg8[%c0_115, %c0_116, %c0_117] : memref<1x1x1xf32, #tpu.memory_space<vmem>>, vector<1x1x1xf32>
    tpu.vector_store %arg8[%c0_115, %c0_116, %c0_117], %178 {strides = array<i32>} : memref<1x1x1xf32, #tpu.memory_space<vmem>>, vector<1x1x1xf32>,
    return
  }
  func.func @transform_0(%arg0: i32) -> (i32, i32) {
    %c0_i32 = arith.constant 0 : i32
    %c0_i32_0 = arith.constant 0 : i32
    return %c0_i32, %arg0 : i32, i32
  }
  func.func @transform_1(%arg0: i32) -> (i32, i32) {
    %c0_i32 = arith.constant 0 : i32
    %c0_i32_0 = arith.constant 0 : i32
    return %c0_i32, %arg0 : i32, i32
  }
  func.func @transform_2(%arg0: i32) -> (i32, i32) {
    %c0_i32 = arith.constant 0 : i32
    %c0_i32_0 = arith.constant 0 : i32
    %c0_i32_1 = arith.constant 0 : i32
    return %c0_i32, %c0_i32_0 : i32, i32
  }
  func.func @transform_3(%arg0: i32) -> (i32, i32, i32) {
    %c0_i32 = arith.constant 0 : i32
    %c0_i32_0 = arith.constant 0 : i32
    %c0_i32_1 = arith.constant 0 : i32
    %c0_i32_2 = arith.constant 0 : i32
    return %c0_i32, %c0_i32_0, %c0_i32_1 : i32, i32, i32
  }
  func.func @transform_4(%arg0: i32) -> (i32, i32) {
    %c0_i32 = arith.constant 0 : i32
    %c0_i32_0 = arith.constant 0 : i32
    %c0_i32_1 = arith.constant 0 : i32
    return %c0_i32, %c0_i32_0 : i32, i32
  }
  func.func @transform_5(%arg0: i32) -> (i32, i32, i32) {
    %c0_i32 = arith.constant 0 : i32
    %c0_i32_0 = arith.constant 0 : i32
    %c0_i32_1 = arith.constant 0 : i32
    %c0_i32_2 = arith.constant 0 : i32
    return %c0_i32, %c0_i32_0, %c0_i32_1 : i32, i32, i32
  }
  func.func @transform_6(%arg0: i32) -> (i32, i32) {
    %c0_i32 = arith.constant 0 : i32
    %c0_i32_0 = arith.constant 0 : i32
    %c0_i32_1 = arith.constant 0 : i32
    return %c0_i32, %c0_i32_0 : i32, i32
  }
  func.func @transform_7(%arg0: i32) -> (i32, i32, i32) {
    %c0_i32 = arith.constant 0 : i32
    %c0_i32_0 = arith.constant 0 : i32
    %c0_i32_1 = arith.constant 0 : i32
    return %arg0, %c0_i32, %c0_i32_0 : i32, i32, i32
  }
}

</mosaic_0001>

<bundles_post_ra>
// kernel: tpu_custom_call.1
= control target key start
LH: loop header
LB: loop body
LE: loop exit
PB: predicated region body
PF: predicated region fallthrough
CT: control target
= control target key end

     0   :  { %s1785_s26 = smov 0   ;;  %s2388_s0 = inlined_call_operand.vmem [shape: bf16[4,512], index: 0, kind: input, shape index: {}]   ;;  %s2389_s1 = inlined_call_operand.vmem [shape: bf16[1,512], index: 1, kind: input, shape index: {}]   ;;  %s2390_s2 = inlined_call_operand.vmem [shape: f32[9,256], index: 2, kind: input, shape index: {}]   ;;  %s2391_s3 = inlined_call_operand.vmem [shape: bf16[9,16,4], index: 3, kind: input, shape index: {}]   ;;  %s2392_s4 = inlined_call_operand.vmem [shape: f32[16,1], index: 4, kind: input, shape index: {}]   ;;  %s2393_s5 = inlined_call_operand.vmem [shape: f32[9,16,1], index: 5, kind: input, shape index: {}]   ;;  %s2394_s6 = inlined_call_operand.<no memory space> [shape: f32[1,1], index: 6, kind: input, shape index: {}]   ;;  %s2395_s7 = inlined_call_operand.vmem [shape: f32[2,1,1], index: 7, kind: output, shape index: {}]  }
   0x1   :  { %v12_v0 = vstv %s2394_s6 }
   0x2   :  { %13 = vst [vmem:[#allocation2] sm:$0x1] %v12_v0 }
   0x3 LB: > { %s1791_s27 = sadd.s32 4294967295, %s1731_s26   ;;  %p1616_p0 = scmp.ge.s32.totalorder %s1731_s26, 1  ;;  %s1731_s26 = sphi %s1785_s26, %s19_s26  }
   0x4   : > { %p250_p1 = scmp.lt.s32.totalorder %s1731_s26, 3 }
   0x6   : > { %p251_p2 = pnand %p1616_p0, %p250_p1 }
   0x7   : > { %s1617_s28 = sshll.u32 (!%p251_p2), %s1791_s27, 1  ;;  %s1735_s29 = smov (!%p251_p2), 16  }
   0x8   : > { %254 = sbr.rel (%p251_p2) target bundleno = 783 (0x30f), region = 48  ;;  %p285_p3 = scmp.lt.s32.totalorder (!%p251_p2), %s1617_s28, 3 }
   0x9   : > { %s1736_s30 = smov (!%p251_p2), 15   ;;  %s1738_s9 = smov (!%p251_p2), 127  }
   0xa   : > { %s1739_s10 = smov (!%p251_p2), 113   ;;  %s1740_s11 = smov (!%p251_p2), 112  }
   0xb   : > { %s1741_s12 = smov (!%p251_p2), 111   ;;  %p295_p4 = scmp.lt.s32.totalorder (!%p251_p2), %s1791_s27, 1 }
   0xd   : > { %v1733_v1 = vmov 0   ;;  %s2397_s28 = smov (!%p285_p3, %s1617_s28), 3  ;;  %vm320_vm0 = vcmask 1041408   ;;  %v1708_v5 = vld [vmem:[%s2391_s3] sm:$0xff]   ;;  %v1709_v6 = vld [vmem:[%s2391_s3 + $0x8] sm:$0xff]   ;;  %vm316_vm1 = vcmask 31744  }
   0xe   : > { %359 = vmatprep.mubr.bf16.mxu0 %v1733_v1  ;;  %444 = vmatprep.mubr.bf16.mxu1 %v1733_v1  ;;  %s1618_s6 = sshll.u32 %s2397_s28, 1  ;;  %v1076_v7 = vld [vmem:[%s2392_s4 + $0x8] sm:$0xff]  ;;  %v1075_v8 = vld [vmem:[%s2392_s4] sm:$0xff]  ;;  %v1710_v11 = vld [vmem:[%s2391_s3 + $0x10] sm:$0xff]   ;;  %vm1548_vm10 = vcmask 1040384   ;;  %s2399_s27 = smov (!%p295_p4, %s1791_s27), 1 }
   0xf   : > { %1707 = vset.pattern.permute.xlu1 %v1733_v1  ;;  %1706 = vset.pattern.permute.xlu0 %v1733_v1  ;;  %s288_s8 = scalar_lea.vmem %s2388_s0, %s1618_s6  ;;  %v1107_v9 = vld [vmem:[%s2393_s5] sm:$0xff]  ;;  %v1108_v10 = vld [vmem:[%s2393_s5 + $0x8] sm:$0xff]  ;;  %v1711_v12 = vld [vmem:[%s2391_s3 + $0x18] sm:$0xff]   ;;  %s1734_s6 = smov 17   ;;  %vm1554_vm11 = vcmask 0  }
  0x10   : > { %v1621_v2 = vld.sshfl [vmem:[%s288_s8] sm:$0x33 pattern:$0x76325410]  ;;  %1084 = vperm.xlu1 %1707, %v1076_v7   ;;  %1079 = vperm.xlu0 %1706, %v1075_v8   ;;  %v1671_v13 = vld [vmem:[%s2393_s5 + $0x10] sm:$0xff]  ;;  %v1672_v14 = vld [vmem:[%s2393_s5 + $0x18] sm:$0xff] }
  0x11   : > { %v315_v3 = vcombine.high %v1621_v2, %v1621_v2  ;;  %v322_v4 = vsel %vm320_vm0, %v1621_v2, 0  ;;  %v1712_v15 = vld [vmem:[%s2391_s3 + $0x20] sm:$0xff]   ;;  %v1713_v16 = vld [vmem:[%s2391_s3 + $0x28] sm:$0xff]   ;;  %v1714_v19 = vld [vmem:[%s2391_s3 + $0x30] sm:$0xff]   ;;  %s1737_s8 = smov 1  }
  0x12   : > { %v1673_v17 = vld [vmem:[%s2393_s5 + $0x20] sm:$0xff]  ;;  %v1674_v18 = vld [vmem:[%s2393_s5 + $0x28] sm:$0xff]  ;;  %v1715_v20 = vld [vmem:[%s2391_s3 + $0x38] sm:$0xff]  }
  0x13   : > { %1622 = vmatprep.subr.msk.bf16.mxu0 %vm320_vm0, %v315_v3  ;;  %1627 = vmatprep.subr.msk.bf16.mxu1 %vm320_vm0, %v315_v3  ;;  %v1675_v21 = vld [vmem:[%s2393_s5 + $0x30] sm:$0xff]  ;;  %v1676_v22 = vld [vmem:[%s2393_s5 + $0x38] sm:$0xff]  ;;  %v1716_v23 = vld [vmem:[%s2391_s3 + $0x40] sm:$0xff]  }
  0x14   : > { %342 = vmatpush1.bf16.msra.mxu0 %v322_v4  ;;  %427 = vmatpush1.bf16.msra.mxu1 %v322_v4  ;;  %v1678_v60 = vld [vmem:[%s2393_s5 + $0x48] sm:$0xff]  ;;  %v1677_v61 = vld [vmem:[%s2393_s5 + $0x40] sm:$0xff]  ;;  %v1680_v62 = vld [vmem:[%s2393_s5 + $0x58] sm:$0xff] }
  0x15   : > { %1633 = vmatprep.subr.msk.bf16.mxu0 %vm320_vm0, %v315_v3  ;;  %1639 = vmatprep.subr.msk.bf16.mxu1 %vm320_vm0, %v315_v3  ;;  %v1679_v63 = vld [vmem:[%s2393_s5 + $0x50] sm:$0xff]  ;;  %v1682_v0 = vld [vmem:[%s2393_s5 + $0x68] sm:$0xff]  ;;  %v1684_v2 = vld [vmem:[%s2393_s5 + $0x78] sm:$0xff] }
  0x16   : > { %1111 = vperm.xlu1 %1707, %v1107_v9   ;;  %1116 = vperm.xlu0 %1706, %v1108_v10  }
  0x17   : > { %1623 = vmatmul.mubr.msk.bf16.vlgmr.msra.gmra.mxu0 %vm316_vm1, %v1708_v5  ;;  %1628 = vmatmul.mubr.msk.bf16.vlgmr.msra.gmra.mxu1 %vm316_vm1, %v1709_v6  ;;  %v1685_v5 = vld [vmem:[%s2393_s5 + $0x80] sm:$0xff] }
  0x18   : > { %515 = vmatpush1.bf16.msra.mxu0 %v322_v4  ;;  %532 = vmatprep.mubr.bf16.mxu0 %v1733_v1 }
  0x19   : > { %603 = vmatpush1.bf16.msra.mxu1 %v322_v4  ;;  %620 = vmatprep.mubr.bf16.mxu1 %v1733_v1 }
  0x1a   : > { %1645 = vmatprep.subr.msk.bf16.mxu0 %vm320_vm0, %v315_v3  ;;  %1650 = vmatprep.subr.msk.bf16.mxu1 %vm320_vm0, %v315_v3 }
  0x1b   : > { %1156 = vperm.xlu1 %1707, %v1671_v13   ;;  %1161 = vperm.xlu0 %1706, %v1672_v14  }
  0x1f   : > { %1634 = vmatmul.mubr.msk.bf16.vlgmr.msra.gmra.mxu0 %vm316_vm1, %v1710_v11  ;;  %1640 = vmatmul.mubr.msk.bf16.vlgmr.msra.gmra.mxu1 %vm316_vm1, %v1711_v12 }
  0x20   : > { %691 = vmatpush1.bf16.msra.mxu0 %v322_v4  ;;  %749 = vmatpush1.bf16.msra.mxu1 %v322_v4 }
  0x21   : > { %708 = vmatprep.mubr.bf16.mxu0 %v1733_v1  ;;  %766 = vmatprep.mubr.bf16.mxu1 %v1733_v1 }
  0x22   : > { %1656 = vmatprep.subr.msk.bf16.mxu0 %vm320_vm0, %v315_v3  ;;  %1662 = vmatprep.subr.msk.bf16.mxu1 %vm320_vm0, %v315_v3 }
  0x23   : > { %1203 = vperm.xlu1 %1707, %v1673_v17   ;;  %1208 = vperm.xlu0 %1706, %v1674_v18  }
  0x27   : > { %1646 = vmatmul.mubr.msk.bf16.vlgmr.msra.gmra.mxu0 %vm316_vm1, %v1712_v15  ;;  %1651 = vmatmul.mubr.msk.bf16.vlgmr.msra.gmra.mxu1 %vm316_vm1, %v1713_v16 }
  0x28   : > { %837 = vmatpush1.bf16.msra.mxu0 %v322_v4  ;;  %854 = vmatprep.mubr.bf16.mxu0 %v1733_v1 }
  0x29   : > { %925 = vmatpush1.bf16.msra.mxu1 %v322_v4  ;;  %942 = vmatprep.mubr.bf16.mxu1 %v1733_v1 }
  0x2a   : > { %1668 = vmatprep.subr.msk.bf16.mxu0 %vm320_vm0, %v315_v3  ;;  %1250 = vperm.xlu1 %1707, %v1675_v21   ;;  %v1683_v3 = vld [vmem:[%s2393_s5 + $0x70] sm:$0xff] }
  0x2b   : > { %1255 = vperm.xlu0 %1706, %v1676_v22  }
  0x2f   : > { %1657 = vmatmul.mubr.msk.bf16.vlgmr.msra.gmra.mxu0 %vm316_vm1, %v1714_v19  ;;  %1663 = vmatmul.mubr.msk.bf16.vlgmr.msra.gmra.mxu1 %vm316_vm1, %v1715_v20 }
  0x30   : > { %1013 = vmatpush1.bf16.msra.mxu0 %v322_v4  ;;  %1030 = vmatprep.mubr.bf16.mxu0 %v1733_v1  ;;  %v1681_v1 = vld [vmem:[%s2393_s5 + $0x60] sm:$0xff]  ;;  %v1686_v4 = vld [vmem:[%s2393_s5 + $0x88] sm:$0xff] }
  0x37   : > { %1669 = vmatmul.mubr.msk.bf16.vlgmr.msra.gmra.mxu0 %vm316_vm1, %v1716_v23 }
  0x8b   : > { %v1959_v6 = vpop.permute.xlu0 %1079  ;;  %v1961_v7 = vpop.permute.xlu1 %1084 }
  0x91   : > { %v1963_v8 = vpop.permute.xlu0 %1116  ;;  %v1965_v9 = vpop.permute.xlu1 %1111 }
  0x96   : > { %v1967_v10 = vpop.permute.xlu0 %1161  ;;  %v1969_v11 = vpop.permute.xlu1 %1156 }
  0x9e   : > { %v1971_v12 = vpop.permute.xlu0 %1208  ;;  %v1973_v13 = vpop.permute.xlu1 %1203 }
  0xa5   : > { %v1977_v15 = vpop.permute.xlu1 %1250 }
  0xa6   : > { %v1975_v14 = vpop.permute.xlu0 %1255 }
  0xd7   : > { %v361_v24 = vpop.f32.mrf.mxu0  ;;  %v446_v25 = vpop.f32.mrf.mxu1 }
  0xd8   : > { %370 = vrot.lane.b32.xlu0 %v361_v24, %s1734_s6 }
  0xd9   : > { %v363_v26 = vpop.f32.mrf.mxu0  ;;  %v448_v27 = vpop.f32.mrf.mxu1 }
  0xda   : > { %374 = vrot.lane.b32.xlu1 %v363_v26, %s1734_s6 }
  0xdb   : > { %v365_v28 = vpop.f32.mrf.mxu0  ;;  %v450_v29 = vpop.f32.mrf.mxu1 }
  0xdc   : > { %455 = vrot.lane.b32.xlu0 %v446_v25, %s1735_s29 }
  0xdd   : > { %v367_v30 = vpop.f32.mrf.mxu0  ;;  %v452_v31 = vpop.f32.mrf.mxu1 }
  0xde   : > { %457 = vrot.lane.b32.xlu1 %v450_v29, %s1735_s29 }
  0xdf   : > { %v534_v32 = vpop.f32.mrf.mxu0  ;;  %v622_v34 = vpop.f32.mrf.mxu1 }
  0xe0   : > { %459 = vrot.lane.b32.xlu0 %v448_v27, %s1735_s29 }
  0xe1   : > { %v536_v33 = vpop.f32.mrf.mxu0  ;;  %v624_v36 = vpop.f32.mrf.mxu1 }
  0xe2   : > { %376 = vrot.lane.b32.xlu1 %v367_v30, %s1734_s6 }
  0xe3   : > { %v538_v35 = vpop.f32.mrf.mxu0  ;;  %v626_v38 = vpop.f32.mrf.mxu1 }
  0xe4   : > { %372 = vrot.lane.b32.xlu0 %v365_v28, %s1734_s6  ;;  %v378_v28 = vlaneseq }
  0xe5   : > { %v540_v37 = vpop.f32.mrf.mxu0  ;;  %v628_v40 = vpop.f32.mrf.mxu1 }
  0xe6   : > { %461 = vrot.lane.b32.xlu1 %v452_v31, %s1735_s29  ;;  %v1981_v31 = vshrl.u32 %v378_v28, 7 }
  0xe7   : > { %v1898_v39 = vpop.f32.mrf.mxu0  ;;  %v768_v42 = vpop.f32.mrf.mxu1 }
  0xe8   : > { %543 = vrot.lane.b32.xlu0 %v534_v32, %s1736_s30 }
  0xe9   : > { %v1902_v41 = vpop.f32.mrf.mxu0  ;;  %v770_v44 = vpop.f32.mrf.mxu1 }
  0xea   : > { %545 = vrot.lane.b32.xlu1 %v538_v35, %s1736_s30  ;;  %v1986_v35 = vsub.s32 0, %v1981_v31 }
  0xeb   : > { %v1906_v43 = vpop.f32.mrf.mxu0  ;;  %v772_v46 = vpop.f32.mrf.mxu1 }
  0xec   : > { %631 = vrot.lane.b32.xlu0 %v622_v34, %s1737_s8  ;;  %v1983_v34 = vand.u32 127, %v378_v28 }
  0xed   : > { %v1910_v45 = vpop.f32.mrf.mxu0  ;;  %v774_v48 = vpop.f32.mrf.mxu1 }
  0xee   : > { %633 = vrot.lane.b32.xlu1 %v626_v38, %s1737_s8  ;;  %v385_v38 = vld [vmem:[%s2390_s2] ss:$8 sm:$0x3]  ;;  %vm463_vm2 = vcmp.lt.s32.totalorder %v1983_v34, 16  ;;  %vm380_vm3 = vcmp.lt.s32.totalorder %v1983_v34, 17  ;;  %vm551_vm4 = vcmp.lt.s32.totalorder %v1983_v34, 15 }
  0xef   : > { %v856_v47 = vpop.f32.mrf.mxu0  ;;  %v944_v50 = vpop.f32.mrf.mxu1  ;;  %vm639_vm5 = vcmp.lt.s32.totalorder %v1983_v34, 1  ;;  %vm785_vm6 = vcmp.lt.s32.totalorder %v1983_v34, 127  ;;  %vm873_vm7 = vcmp.lt.s32.totalorder %v1983_v34, 113  ;;  %vm961_vm8 = vcmp.lt.s32.totalorder %v1983_v34, 112 }
  0xf0   : > { %547 = vrot.lane.b32.xlu0 %v536_v33, %s1736_s30  ;;  %vm1049_vm9 = vcmp.lt.s32.totalorder %v1983_v34, 111 }
  0xf1   : > { %v858_v49 = vpop.f32.mrf.mxu0  ;;  %v946_v52 = vpop.f32.mrf.mxu1 }
  0xf2   : > { %549 = vrot.lane.b32.xlu1 %v540_v37, %s1736_s30 }
  0xf3   : > { %v860_v51 = vpop.f32.mrf.mxu0  ;;  %v948_v53 = vpop.f32.mrf.mxu1 }
  0xf4   : > { %635 = vrot.lane.b32.xlu0 %v624_v36, %s1737_s8  ;;  %v1989_v36 = vsub.s32 1, %v1981_v31 }
  0xf5   : > { %v862_v54 = vpop.f32.mrf.mxu0  ;;  %v950_v56 = vpop.f32.mrf.mxu1 }
  0xf6   : > { %637 = vrot.lane.b32.xlu1 %v628_v40, %s1737_s8  ;;  %v1629_v40 = vld [vmem:[%s2390_s2 + $0x1] ss:$8 sm:$0x3] }
  0xf7   : > { %v1032_v55 = vpop.f32.mrf.mxu0 }
  0xf8   : > { %777 = vrot.lane.b32.xlu0 %v768_v42, %s1738_s9  ;;  %v1635_v42 = vld [vmem:[%s2390_s2 + $0x2] ss:$8 sm:$0x3] }
  0xf9   : > { %v1034_v57 = vpop.f32.mrf.mxu0 }
  0xfa   : > { %779 = vrot.lane.b32.xlu1 %v772_v46, %s1738_s9  ;;  %v2007_v46 = vrot.slane %v385_v38, %v1986_v35 }
  0xfb   : > { %v1036_v58 = vpop.f32.mrf.mxu0 }
  0xfc   : > { %781 = vrot.lane.b32.xlu0 %v770_v44, %s1738_s9 }
  0xfd   : > { %v1038_v59 = vpop.f32.mrf.mxu0 }
  0xfe   : > { %783 = vrot.lane.b32.xlu1 %v774_v48, %s1738_s9  ;;  %v2013_v48 = vrot.slane %v1629_v40, %v1986_v35 }
 0x100   : > { %865 = vrot.lane.b32.xlu0 %v856_v47, %s1739_s10  ;;  %v2010_v47 = vrot.slane %v385_v38, %v1989_v36 }
 0x102   : > { %867 = vrot.lane.b32.xlu1 %v860_v51, %s1739_s10  ;;  %v1652_v51 = vld [vmem:[%s2390_s2 + $0x5] ss:$8 sm:$0x3] }
 0x104   : > { %953 = vrot.lane.b32.xlu0 %v944_v50, %s1740_s11  ;;  %v1641_v50 = vld [vmem:[%s2390_s2 + $0x3] ss:$8 sm:$0x3] }
 0x106   : > { %955 = vrot.lane.b32.xlu1 %v948_v53, %s1740_s11 }
 0x108   : > { %869 = vrot.lane.b32.xlu0 %v858_v49, %s1739_s10  ;;  %v2016_v49 = vrot.slane %v1629_v40, %v1989_v36 }
 0x10a   : > { %871 = vrot.lane.b32.xlu1 %v862_v54, %s1739_s10 }
 0x10c   : > { %957 = vrot.lane.b32.xlu0 %v946_v52, %s1740_s11 }
 0x10e   : > { %959 = vrot.lane.b32.xlu1 %v950_v56, %s1740_s11 }
 0x110   : > { %1041 = vrot.lane.b32.xlu0 %v1032_v55, %s1741_s12  ;;  %v2032_v55 = vrot.slane %v1635_v42, %v1986_v35 }
 0x112   : > { %1043 = vrot.lane.b32.xlu1 %v1036_v58, %s1741_s12  ;;  %v2039_v58 = vrot.slane %v1635_v42, %v1989_v36 }
 0x114   : > { %1045 = vrot.lane.b32.xlu0 %v1034_v57, %s1741_s12 }
 0x116   : > { %1047 = vrot.lane.b32.xlu1 %v1038_v59, %s1741_s12 }
 0x118   : > { %1290 = vperm.xlu0 %1706, %v1678_v60   ;;  %v2045_v60 = vrot.slane %v1641_v50, %v1986_v35 }
 0x11a   : > { %1285 = vperm.xlu1 %1707, %v1677_v61   ;;  %v2048_v61 = vrot.slane %v1641_v50, %v1989_v36 }
 0x11c   : > { %1335 = vperm.xlu0 %1706, %v1680_v62   ;;  %v2051_v62 = vrot.slane %v1652_v51, %v1986_v35 }
 0x11e   : > { %1330 = vperm.xlu1 %1707, %v1679_v63   ;;  %v2054_v63 = vrot.slane %v1652_v51, %v1989_v36 }
 0x120   : > { %1382 = vperm.xlu0 %1706, %v1682_v0  }
 0x122   : > { %1377 = vperm.xlu1 %1707, %v1681_v1  }
 0x124   : > { %1429 = vperm.xlu0 %1706, %v1684_v2  }
 0x126   : > { %1424 = vperm.xlu1 %1707, %v1683_v3  }
 0x128   : > { %1476 = vperm.xlu0 %1706, %v1686_v4  }
 0x12a   : > { %1471 = vperm.xlu1 %1707, %v1685_v5  }
 0x14a   : > { %v371_v16 = vpop.permute.xlu0 %370 }
 0x14c   : > { %v375_v17 = vpop.permute.xlu1 %374 }
 0x14d   : > { %v381_v56 = vsel %vm380_vm3, %v371_v16, %v375_v17  ;;  %v383_v57 = vsel %vm380_vm3, %v375_v17, %v371_v16 }
 0x14e   : > { %v456_v18 = vpop.permute.xlu0 %455  ;;  %v397_v5 = vmul.f32 %v2007_v46, %v383_v57  ;;  %v398_v16 = vmul.f32 %v2010_v47, %v381_v56 }
 0x150   : > { %v458_v19 = vpop.permute.xlu1 %457 }
 0x152   : > { %v460_v20 = vpop.permute.xlu0 %459 }
 0x153   : > { %v464_v53 = vsel %vm463_vm2, %v456_v18, %v460_v20  ;;  %v466_v54 = vsel %vm463_vm2, %v460_v20, %v456_v18 }
 0x154   : > { %v377_v21 = vpop.permute.xlu1 %376  ;;  %v481_v0 = vmul.f32 %v2013_v48, %v466_v54  ;;  %v482_v1 = vmul.f32 %v2016_v49, %v464_v53 }
 0x156   : > { %v373_v22 = vpop.permute.xlu0 %372 }
 0x157   : > { %v382_v20 = vsel %vm380_vm3, %v373_v22, %v377_v21 }
 0x158   : > { %v462_v23 = vpop.permute.xlu1 %461  ;;  %v400_v57 = vmul.f32 %v2010_v47, %v382_v20 }
 0x159   : > { %v465_v17 = vsel %vm463_vm2, %v458_v19, %v462_v23  ;;  %v467_v18 = vsel %vm463_vm2, %v462_v23, %v458_v19 }
 0x15a   : > { %v544_v24 = vpop.permute.xlu0 %543  ;;  %v483_v50 = vmul.f32 %v2013_v48, %v467_v18  ;;  %v484_v51 = vmul.f32 %v2016_v49, %v465_v17 }
 0x15c   : > { %v546_v25 = vpop.permute.xlu1 %545  ;;  %v488_v18 = vadd.f32 %v484_v51, %v400_v57 }
 0x15e   : > { %v632_v26 = vpop.permute.xlu0 %631 }
 0x160   : > { %v1979_v27 = vpop.permute.xlu1 %633 }
 0x162   : > { %v548_v29 = vpop.permute.xlu0 %547 }
 0x163   : > { %v552_v2 = vsel %vm551_vm4, %v544_v24, %v548_v29  ;;  %v554_v3 = vsel %vm551_vm4, %v548_v29, %v544_v24  ;;  %v384_v24 = vsel %vm380_vm3, %v377_v21, %v373_v22  ;;  %v485_v21 = vadd.f32 %v481_v0, %v397_v5 }
 0x164   : > { %v550_v30 = vpop.permute.xlu1 %549  ;;  %v569_v40 = vmul.f32 %v2032_v55, %v554_v3  ;;  %v570_v42 = vmul.f32 %v2039_v58, %v552_v2  ;;  %v486_v22 = vadd.f32 %v482_v1, %v398_v16  ;;  %v1664_v3 = vld [vmem:[%s2390_s2 + $0x7] ss:$8 sm:$0x3] }
 0x165   : > { %v553_v19 = vsel %vm551_vm4, %v546_v25, %v550_v30  ;;  %v555_v23 = vsel %vm551_vm4, %v550_v30, %v546_v25  ;;  %v399_v30 = vmul.f32 %v2007_v46, %v384_v24 }
 0x166   : > { %v636_v32 = vpop.permute.xlu0 %635  ;;  %v571_v0 = vmul.f32 %v2032_v55, %v555_v23  ;;  %v572_v1 = vmul.f32 %v2039_v58, %v553_v19  ;;  %v573_v5 = vadd.f32 %v569_v40, %v485_v21  ;;  %v574_v16 = vadd.f32 %v570_v42, %v486_v22 }
 0x167   : > { %v640_v28 = vsel %vm639_vm5, %v632_v26, %v636_v32  ;;  %v642_v29 = vsel %vm639_vm5, %v636_v32, %v632_v26  ;;  %v1658_v32 = vld [vmem:[%s2390_s2 + $0x6] ss:$8 sm:$0x3]  ;;  %v2119_v42 = vrot.slane %v1664_v3, %v1986_v35 }
 0x168   : > { %v638_v33 = vpop.permute.xlu1 %637  ;;  %v657_v53 = vmul.f32 %v2045_v60, %v642_v29  ;;  %v658_v54 = vmul.f32 %v2048_v61, %v640_v28  ;;  %v2107_v17 = vrot.slane %v1658_v32, %v1986_v35  ;;  %v1670_v29 = vld [vmem:[%s2390_s2 + $0x10] ss:$8 sm:$0x3]  ;;  %v576_v21 = vadd.f32 %v572_v1, %v488_v18 }
 0x169   : > { %v641_v56 = vsel %vm639_vm5, %v1979_v27, %v638_v33  ;;  %v643_v25 = vsel %vm639_vm5, %v638_v33, %v1979_v27  ;;  %v2110_v27 = vrot.slane %v1658_v32, %v1989_v36  ;;  %v487_v33 = vadd.f32 %v483_v50, %v399_v30 }
 0x16a   : > { %v1991_v37 = vpop.permute.xlu0 %777  ;;  %v659_v20 = vmul.f32 %v2045_v60, %v643_v25  ;;  %v660_v24 = vmul.f32 %v2048_v61, %v641_v56  ;;  %v661_v19 = vadd.f32 %v657_v53, %v573_v5  ;;  %v662_v40 = vadd.f32 %v658_v54, %v574_v16 }
 0x16b   : > { %v575_v23 = vadd.f32 %v571_v0, %v487_v33  ;;  %v2122_v50 = vrot.slane %v1664_v3, %v1989_v36  ;;  %v2134_v53 = vrot.slane %v1670_v29, %v1986_v35  ;;  %v2137_v54 = vrot.slane %v1670_v29, %v1989_v36 }
 0x16c   : > { %v2003_v44 = vpop.permute.xlu1 %779  ;;  %v664_v25 = vadd.f32 %v660_v24, %v576_v21 }
 0x16d   : > { %v663_v56 = vadd.f32 %v659_v20, %v575_v23 }
 0x16e   : > { %v2024_v52 = vpop.permute.xlu0 %781 }
 0x16f   : > { %v786_v51 = vsel %vm785_vm6, %v1991_v37, %v2024_v52  ;;  %v788_v32 = vsel %vm785_vm6, %v2024_v52, %v1991_v37  ;;  %v719_v37 = vadd.f32 %v1898_v39, %v661_v19  ;;  %v720_v52 = vadd.f32 %v1902_v41, %v662_v40 }
 0x170   : > { %v2042_v59 = vpop.permute.xlu1 %783  ;;  %v803_v3 = vmul.f32 %v2051_v62, %v786_v51  ;;  %v804_v5 = vmul.f32 %v2054_v63, %v788_v32  ;;  %v721_v29 = vadd.f32 %v1906_v43, %v663_v56  ;;  %v722_v19 = vadd.f32 %v1910_v45, %v664_v25 }
 0x171   : > { %v787_v30 = vsel %vm785_vm6, %v2003_v44, %v2042_v59  ;;  %v789_v57 = vsel %vm785_vm6, %v2042_v59, %v2003_v44 }
 0x172   : > { %v2063_v4 = vpop.permute.xlu0 %865  ;;  %v805_v41 = vmul.f32 %v2051_v62, %v787_v30  ;;  %v806_v16 = vmul.f32 %v2054_v63, %v789_v57  ;;  %v808_v21 = vadd.f32 %v804_v5, %v720_v52 }
 0x174   : > { %v868_v38 = vpop.permute.xlu1 %867  ;;  %v809_v30 = vadd.f32 %v805_v41, %v721_v29  ;;  %v810_v57 = vadd.f32 %v806_v16, %v722_v19 }
 0x176   : > { %v954_v26 = vpop.permute.xlu0 %953 }
 0x178   : > { %v956_v2 = vpop.permute.xlu1 %955 }
 0x17a   : > { %v870_v28 = vpop.permute.xlu0 %869 }
 0x17b   : > { %v874_v36 = vsel %vm873_vm7, %v2063_v4, %v870_v28  ;;  %v876_v1 = vsel %vm873_vm7, %v870_v28, %v2063_v4 }
 0x17c   : > { %v872_v22 = vpop.permute.xlu1 %871  ;;  %v891_v18 = vmul.f32 %v2107_v17, %v874_v36  ;;  %v892_v20 = vmul.f32 %v2110_v27, %v876_v1 }
 0x17d   : > { %v875_v44 = vsel %vm873_vm7, %v868_v38, %v872_v22  ;;  %v877_v39 = vsel %vm873_vm7, %v872_v22, %v868_v38 }
 0x17e   : > { %v958_v0 = vpop.permute.xlu0 %957  ;;  %v893_v40 = vmul.f32 %v2107_v17, %v875_v44  ;;  %v894_v23 = vmul.f32 %v2110_v27, %v877_v39  ;;  %v896_v56 = vadd.f32 %v892_v20, %v808_v21 }
 0x17f   : > { %v962_v33 = vsel %vm961_vm8, %v954_v26, %v958_v0  ;;  %v964_v4 = vsel %vm961_vm8, %v958_v0, %v954_v26  ;;  %v807_v26 = vadd.f32 %v803_v3, %v719_v37 }
 0x180   : > { %v960_v59 = vpop.permute.xlu1 %959  ;;  %v979_v22 = vmul.f32 %v2119_v42, %v962_v33  ;;  %v980_v51 = vmul.f32 %v2122_v50, %v964_v4  ;;  %v897_v25 = vadd.f32 %v893_v40, %v809_v30  ;;  %v898_v36 = vadd.f32 %v894_v23, %v810_v57 }
 0x181   : > { %v963_v24 = vsel %vm961_vm8, %v956_v2, %v960_v59  ;;  %v965_v38 = vsel %vm961_vm8, %v960_v59, %v956_v2  ;;  %v895_v43 = vadd.f32 %v891_v18, %v807_v26 }
 0x182   : > { %v1042_v28 = vpop.permute.xlu0 %1041  ;;  %v981_v2 = vmul.f32 %v2119_v42, %v963_v24  ;;  %v982_v0 = vmul.f32 %v2122_v50, %v965_v38  ;;  %v984_v3 = vadd.f32 %v980_v51, %v896_v56  ;;  %v1501_v56 = vld [vmem:[#allocation2] sm:$0x1] }
 0x183   : > { %v983_v1 = vadd.f32 %v979_v22, %v895_v43 }
 0x184   : > { %v1044_v32 = vpop.permute.xlu1 %1043  ;;  %v985_v59 = vadd.f32 %v981_v2, %v897_v25  ;;  %v986_v41 = vadd.f32 %v982_v0, %v898_v36 }
 0x186   : > { %v1046_v45 = vpop.permute.xlu0 %1045 }
 0x187   : > { %v1050_v37 = vsel %vm1049_vm9, %v1042_v28, %v1046_v45  ;;  %v1052_v52 = vsel %vm1049_vm9, %v1046_v45, %v1042_v28 }
 0x188   : > { %v1067_v5 = vmul.f32 %v2134_v53, %v1050_v37  ;;  %v1068_v44 = vmul.f32 %v2137_v54, %v1052_v52  ;;  %v1048_v39 = vpop.permute.xlu1 %1047 }
 0x189   : > { %v1051_v16 = vsel %vm1049_vm9, %v1044_v32, %v1048_v39  ;;  %v1053_v33 = vsel %vm1049_vm9, %v1048_v39, %v1044_v32 }
 0x18a   : > { %v1071_v4 = vadd.f32 %v1067_v5, %v983_v1  ;;  %v1072_v18 = vadd.f32 %v1068_v44, %v984_v3  ;;  %v1069_v20 = vmul.f32 %v2134_v53, %v1051_v16  ;;  %v1070_v24 = vmul.f32 %v2137_v54, %v1053_v33 }
 0x18c   : > { %v1087_v38 = vadd.f32 %v1959_v6, %v1071_v4  ;;  %v1073_v28 = vadd.f32 %v1069_v20, %v985_v59  ;;  %v1074_v29 = vadd.f32 %v1070_v24, %v986_v41  ;;  %v1088_v19 = vadd.f32 %v1959_v6, %v1072_v18 }
 0x18e   : > { %v1091_v40 = vmax.f32 %v1087_v38, 0.0  ;;  %v1089_v23 = vadd.f32 %v1961_v7, %v1073_v28  ;;  %v1090_v26 = vadd.f32 %v1961_v7, %v1074_v29  ;;  %v1092_v22 = vmax.f32 %v1088_v19, 0.0 }
 0x190   : > { %v1093_v21 = vmax.f32 %v1089_v23, 0.0  ;;  %1095 = vrot.lane.b32.xlu1 %v1091_v40, %s1734_s6  ;;  %v1094_v51 = vmax.f32 %v1090_v26, 0.0 }
 0x192   : > { %1097 = vrot.lane.b32.xlu0 %v1093_v21, %s1734_s6 }
 0x193   : > { %v1291_v32 = vpop.permute.xlu0 %1290 }
 0x194   : > { %v1295_v30 = vmul.f32 %v1291_v32, %v1093_v21  ;;  %v1296_v57 = vmul.f32 %v1291_v32, %v1094_v51  ;;  %1099 = vrot.lane.b32.xlu1 %v1092_v22, %s1734_s6 }
 0x195   : > { %v1286_v2 = vpop.permute.xlu1 %1285 }
 0x196   : > { %v1293_v0 = vmul.f32 %v1286_v2, %v1091_v40  ;;  %v1294_v6 = vmul.f32 %v1286_v2, %v1092_v22  ;;  %1101 = vrot.lane.b32.xlu0 %v1094_v51, %s1734_s6 }
 0x197   : > { %v2235_v25 = vpop.permute.xlu0 %1335 }
 0x198   : > { %v2201_v43 = vadd.f32 %v1295_v30, %v1293_v0  ;;  %v2203_v7 = vadd.f32 %v1296_v57, %v1294_v6  ;;  %1139 = vrot.lane.b32.xlu1 %v1091_v40, %s1735_s29 }
 0x199   : > { %v2233_v45 = vpop.permute.xlu1 %1330 }
 0x19a   : > { %1141 = vrot.lane.b32.xlu0 %v1093_v21, %s1735_s29 }
 0x19b   : > { %v2239_v37 = vpop.permute.xlu0 %1382 }
 0x19c   : > { %1143 = vrot.lane.b32.xlu1 %v1092_v22, %s1735_s29 }
 0x19d   : > { %v2237_v36 = vpop.permute.xlu1 %1377 }
 0x19e   : > { %1145 = vrot.lane.b32.xlu0 %v1094_v51, %s1735_s29 }
 0x19f   : > { %v2243_v1 = vpop.permute.xlu0 %1429 }
 0x1a0   : > { %1186 = vrot.lane.b32.xlu1 %v1091_v40, %s1736_s30 }
 0x1a1   : > { %v2241_v52 = vpop.permute.xlu1 %1424 }
 0x1a2   : > { %1188 = vrot.lane.b32.xlu0 %v1093_v21, %s1736_s30 }
 0x1a3   : > { %v2247_v5 = vpop.permute.xlu0 %1476 }
 0x1a4   : > { %1190 = vrot.lane.b32.xlu1 %v1092_v22, %s1736_s30 }
 0x1a5   : > { %v2245_v3 = vpop.permute.xlu1 %1471 }
 0x1a6   : > { %1192 = vrot.lane.b32.xlu0 %v1094_v51, %s1736_s30  ;;  %s293_s30 = scalar_lea.vmem %s2389_s1, %s2397_s28 }
 0x1a8   : > { %1233 = vrot.lane.b32.xlu1 %v1091_v40, %s1737_s8 }
 0x1aa   : > { %1235 = vrot.lane.b32.xlu0 %v1093_v21, %s1737_s8 }
 0x1ac   : > { %1237 = vrot.lane.b32.xlu1 %v1092_v22, %s1737_s8 }
 0x1ae   : > { %1239 = vrot.lane.b32.xlu0 %v1094_v51, %s1737_s8 }
 0x1b0   : > { %1313 = vrot.lane.b32.xlu1 %v1091_v40, %s1738_s9 }
 0x1b2   : > { %1315 = vrot.lane.b32.xlu0 %v1093_v21, %s1738_s9 }
 0x1b4   : > { %1317 = vrot.lane.b32.xlu1 %v1092_v22, %s1738_s9 }
 0x1b6   : > { %1319 = vrot.lane.b32.xlu0 %v1094_v51, %s1738_s9  ;;  %s297_s9 = scalar_lea.vmem %s2395_s7, %s2399_s27 }
 0x1b8   : > { %1360 = vrot.lane.b32.xlu1 %v1091_v40, %s1739_s10 }
 0x1ba   : > { %1362 = vrot.lane.b32.xlu0 %v1093_v21, %s1739_s10 }
 0x1bc   : > { %1364 = vrot.lane.b32.xlu1 %v1092_v22, %s1739_s10 }
 0x1be   : > { %1366 = vrot.lane.b32.xlu0 %v1094_v51, %s1739_s10 }
 0x1c0   : > { %1407 = vrot.lane.b32.xlu1 %v1091_v40, %s1740_s11 }
 0x1c2   : > { %1409 = vrot.lane.b32.xlu0 %v1093_v21, %s1740_s11 }
 0x1c4   : > { %1411 = vrot.lane.b32.xlu1 %v1092_v22, %s1740_s11 }
 0x1c6   : > { %1413 = vrot.lane.b32.xlu0 %v1094_v51, %s1740_s11 }
 0x1c8   : > { %1454 = vrot.lane.b32.xlu1 %v1091_v40, %s1741_s12 }
 0x1ca   : > { %1456 = vrot.lane.b32.xlu0 %v1093_v21, %s1741_s12 }
 0x1cc   : > { %1458 = vrot.lane.b32.xlu1 %v1092_v22, %s1741_s12 }
 0x1ce   : > { %1460 = vrot.lane.b32.xlu0 %v1094_v51, %s1741_s12 }
 0x1d0   : > { %1504 = vperm.xlu1 %1707, %v1501_v56  }
 0x202   : > { %v1096_v44 = vpop.permute.xlu1 %1095 }
 0x204   : > { %v1098_v39 = vpop.permute.xlu0 %1097 }
 0x206   : > { %v1100_v59 = vpop.permute.xlu1 %1099 }
 0x207   : > { %v1103_v18 = vsel %vm380_vm3, %v1096_v44, %v1100_v59  ;;  %v1105_v20 = vsel %vm380_vm3, %v1100_v59, %v1096_v44 }
 0x208   : > { %v1102_v41 = vpop.permute.xlu0 %1101  ;;  %v1119_v29 = vmul.f32 %v1965_v9, %v1105_v20  ;;  %v1120_v19 = vmul.f32 %v1965_v9, %v1103_v18 }
 0x209   : > { %v1104_v16 = vsel %vm380_vm3, %v1098_v39, %v1102_v41  ;;  %v1106_v33 = vsel %vm380_vm3, %v1102_v41, %v1098_v39 }
 0x20a   : > { %v1140_v4 = vpop.permute.xlu1 %1139  ;;  %v1121_v24 = vmul.f32 %v1963_v8, %v1106_v33  ;;  %v1122_v38 = vmul.f32 %v1963_v8, %v1104_v16 }
 0x20c   : > { %v1142_v28 = vpop.permute.xlu0 %1141  ;;  %v1123_v21 = vadd.f32 %v1121_v24, %v1119_v29  ;;  %v1130_v22 = vadd.f32 %v1122_v38, %v1120_v19 }
 0x20e   : > { %v1144_v40 = vpop.permute.xlu1 %1143  ;;  %v1124_v6 = vrot.slane %v1123_v21, 4  ;;  %v1131_v56 = vrot.slane %v1130_v22, 4 }
 0x20f   : > { %v1147_v23 = vsel %vm463_vm2, %v1140_v4, %v1144_v40  ;;  %v1149_v26 = vsel %vm463_vm2, %v1144_v40, %v1140_v4 }
 0x210   : > { %v1146_v51 = vpop.permute.xlu0 %1145  ;;  %v1164_v30 = vmul.f32 %v1969_v11, %v1149_v26  ;;  %v1165_v9 = vmul.f32 %v1969_v11, %v1147_v23  ;;  %v1125_v4 = vadd.f32 %v1124_v6, %v1123_v21  ;;  %v1132_v18 = vadd.f32 %v1131_v56, %v1130_v22 }
 0x211   : > { %v1148_v32 = vsel %vm463_vm2, %v1142_v28, %v1146_v51  ;;  %v1150_v8 = vsel %vm463_vm2, %v1146_v51, %v1142_v28 }
 0x212   : > { %v1166_v57 = vmul.f32 %v1967_v10, %v1150_v8  ;;  %v1167_v2 = vmul.f32 %v1967_v10, %v1148_v32  ;;  %v1187_v0 = vpop.permute.xlu1 %1186  ;;  %v1126_v22 = vrot.slane %v1125_v4, 2  ;;  %v1133_v51 = vrot.slane %v1132_v18, 2 }
 0x214   : > { %v1168_v44 = vadd.f32 %v1166_v57, %v1164_v30  ;;  %v1175_v39 = vadd.f32 %v1167_v2, %v1165_v9  ;;  %v1189_v59 = vpop.permute.xlu0 %1188 }
 0x216   : > { %v1169_v41 = vrot.slane %v1168_v44, 4  ;;  %v1176_v16 = vrot.slane %v1175_v39, 4  ;;  %v1191_v33 = vpop.permute.xlu1 %1190 }
 0x217   : > { %v1194_v20 = vsel %vm551_vm4, %v1187_v0, %v1191_v33  ;;  %v1196_v11 = vsel %vm551_vm4, %v1191_v33, %v1187_v0 }
 0x218   : > { %v1193_v24 = vpop.permute.xlu0 %1192  ;;  %v1170_v28 = vadd.f32 %v1169_v41, %v1168_v44  ;;  %v1177_v29 = vadd.f32 %v1176_v16, %v1175_v39  ;;  %v1211_v40 = vmul.f32 %v1973_v13, %v1196_v11  ;;  %v1212_v23 = vmul.f32 %v1973_v13, %v1194_v20 }
 0x219   : > { %v1195_v10 = vsel %vm551_vm4, %v1189_v59, %v1193_v24  ;;  %v1197_v38 = vsel %vm551_vm4, %v1193_v24, %v1189_v59  ;;  %v1298_v44 = vrot.slane %v2201_v43, 4  ;;  %v1127_v39 = vadd.f32 %v1126_v22, %v1125_v4 }
 0x21a   : > { %v1234_v19 = vpop.permute.xlu1 %1233  ;;  %v1213_v26 = vmul.f32 %v1971_v12, %v1197_v38  ;;  %v1214_v21 = vmul.f32 %v1971_v12, %v1195_v10  ;;  %v1171_v9 = vrot.slane %v1170_v28, 2  ;;  %v1178_v57 = vrot.slane %v1177_v29, 2 }
 0x21b   : > { %v1305_v12 = vrot.slane %v2203_v7, 4  ;;  %v1134_v59 = vadd.f32 %v1133_v51, %v1132_v18 }
 0x21c   : > { %v1236_v32 = vpop.permute.xlu0 %1235  ;;  %v1215_v8 = vadd.f32 %v1213_v26, %v1211_v40  ;;  %v1222_v30 = vadd.f32 %v1214_v21, %v1212_v23  ;;  %v1172_v4 = vadd.f32 %v1171_v9, %v1170_v28  ;;  %v1179_v18 = vadd.f32 %v1178_v57, %v1177_v29 }
 0x21e   : > { %v1238_v2 = vpop.permute.xlu1 %1237  ;;  %v1216_v0 = vrot.slane %v1215_v8, 4  ;;  %v1223_v6 = vrot.slane %v1222_v30, 4 }
 0x21f   : > { %v1241_v56 = vsel %vm639_vm5, %v1234_v19, %v1238_v2  ;;  %v1243_v13 = vsel %vm639_vm5, %v1238_v2, %v1234_v19 }
 0x220   : > { %v1240_v41 = vpop.permute.xlu0 %1239  ;;  %v1217_v16 = vadd.f32 %v1216_v0, %v1215_v8  ;;  %v1224_v33 = vadd.f32 %v1223_v6, %v1222_v30  ;;  %v1258_v24 = vmul.f32 %v1977_v15, %v1243_v13  ;;  %v1259_v10 = vmul.f32 %v1977_v15, %v1241_v56 }
 0x221   : > { %v1242_v20 = vsel %vm639_vm5, %v1236_v32, %v1240_v41  ;;  %v1244_v11 = vsel %vm639_vm5, %v1240_v41, %v1236_v32  ;;  %v2300_v8 = vadd.f32 %v1298_v44, %v2201_v43  ;;  %v2303_v32 = vadd.f32 %v1305_v12, %v2203_v7 }
 0x222   : > { %v1260_v38 = vmul.f32 %v1975_v14, %v1244_v11  ;;  %v1261_v19 = vmul.f32 %v1975_v14, %v1242_v20  ;;  %v1314_v40 = vpop.permute.xlu1 %1313  ;;  %v1218_v23 = vrot.slane %v1217_v16, 2  ;;  %v1225_v26 = vrot.slane %v1224_v33, 2 }
 0x223   : > { %v1128_v30 = vrot.slane %v1127_v39, 1  ;;  %v1135_v15 = vrot.slane %v1134_v59, 1  ;;  %v1173_v14 = vrot.slane %v1172_v4, 1  ;;  %v1180_v56 = vrot.slane %v1179_v18, 1 }
 0x224   : > { %v1262_v21 = vadd.f32 %v1260_v38, %v1258_v24  ;;  %v1269_v22 = vadd.f32 %v1261_v19, %v1259_v10  ;;  %v1316_v51 = vpop.permute.xlu0 %1315  ;;  %v1219_v9 = vadd.f32 %v1218_v23, %v1217_v16  ;;  %v1226_v57 = vadd.f32 %v1225_v26, %v1224_v33 }
 0x225   : > { %v1129_v38 = vadd.f32 %v1128_v30, %v1127_v39  ;;  %v1136_v19 = vadd.f32 %v1135_v15, %v1134_v59 }
 0x226   : > { %v1263_v2 = vrot.slane %v1262_v21, 4  ;;  %v1270_v0 = vrot.slane %v1269_v22, 4  ;;  %v1318_v6 = vpop.permute.xlu1 %1317 }
 0x227   : > { %v1321_v28 = vsel %vm785_vm6, %v1314_v40, %v1318_v6  ;;  %v1323_v29 = vsel %vm785_vm6, %v1318_v6, %v1314_v40  ;;  %v1220_v6 = vrot.slane %v1219_v9, 1  ;;  %v1138_v39 = vmul.f32 %v1136_v19, %v2010_v47 }
 0x228   : > { %v1264_v43 = vadd.f32 %v1263_v2, %v1262_v21  ;;  %v1271_v13 = vadd.f32 %v1270_v0, %v1269_v22  ;;  %v1320_v44 = vpop.permute.xlu0 %1319  ;;  %v1338_v7 = vmul.f32 %v2233_v45, %v1321_v28  ;;  %v1339_v12 = vmul.f32 %v2233_v45, %v1323_v29 }
 0x229   : > { %v1322_v41 = vsel %vm785_vm6, %v1316_v51, %v1320_v44  ;;  %v1324_v20 = vsel %vm785_vm6, %v1320_v44, %v1316_v51  ;;  %v1300_v22 = vrot.slane %v2300_v8, 2  ;;  %v1307_v2 = vrot.slane %v2303_v32, 2 }
 0x22a   : > { %v1265_v11 = vrot.slane %v1264_v43, 2  ;;  %v1272_v24 = vrot.slane %v1271_v13, 2  ;;  %v1340_v10 = vmul.f32 %v2235_v25, %v1322_v41  ;;  %v1341_v16 = vmul.f32 %v2235_v25, %v1324_v20  ;;  %v1361_v33 = vpop.permute.xlu1 %1360 }
 0x22b   : > { %v1174_v0 = vadd.f32 %v1173_v14, %v1172_v4  ;;  %v1181_v51 = vadd.f32 %v1180_v56, %v1179_v18  ;;  %v1227_v28 = vrot.slane %v1226_v57, 1  ;;  %v1137_v25 = vmul.f32 %v1129_v38, %v2007_v46 }
 0x22c   : > { %v1266_v40 = vadd.f32 %v1265_v11, %v1264_v43  ;;  %v1273_v23 = vadd.f32 %v1272_v24, %v1271_v13  ;;  %v1342_v26 = vadd.f32 %v1340_v10, %v1338_v7  ;;  %v1349_v21 = vadd.f32 %v1341_v16, %v1339_v12  ;;  %v1363_v45 = vpop.permute.xlu0 %1362 }
 0x22d   : > { %v1182_v14 = vmul.f32 %v1174_v0, %v2013_v48  ;;  %v1183_v56 = vmul.f32 %v1181_v51, %v2016_v49  ;;  %v1221_v7 = vadd.f32 %v1220_v6, %v1219_v9  ;;  %v1228_v12 = vadd.f32 %v1227_v28, %v1226_v57 }
 0x22e   : > { %v1343_v29 = vrot.slane %v1342_v26, 4  ;;  %v1350_v44 = vrot.slane %v1349_v21, 4  ;;  %v1365_v41 = vpop.permute.xlu1 %1364  ;;  %v1267_v59 = vrot.slane %v1266_v40, 1  ;;  %v1274_v30 = vrot.slane %v1273_v23, 1 }
 0x22f   : > { %v1368_v13 = vsel %vm873_vm7, %v1361_v33, %v1365_v41  ;;  %v1370_v4 = vsel %vm873_vm7, %v1365_v41, %v1361_v33  ;;  %v1308_v9 = vadd.f32 %v1307_v2, %v2303_v32  ;;  %v1184_v51 = vadd.f32 %v1182_v14, %v1137_v25 }
 0x230   : > { %v1344_v15 = vadd.f32 %v1343_v29, %v1342_v26  ;;  %v1351_v43 = vadd.f32 %v1350_v44, %v1349_v21  ;;  %v1367_v18 = vpop.permute.xlu0 %1366  ;;  %v1385_v10 = vmul.f32 %v2237_v36, %v1368_v13  ;;  %v1386_v16 = vmul.f32 %v2237_v36, %v1370_v4 }
 0x231   : > { %v1369_v46 = vsel %vm873_vm7, %v1363_v45, %v1367_v18  ;;  %v1371_v47 = vsel %vm873_vm7, %v1367_v18, %v1363_v45  ;;  %v1268_v49 = vadd.f32 %v1267_v59, %v1266_v40  ;;  %v1275_v38 = vadd.f32 %v1274_v30, %v1273_v23 }
 0x232   : > { %v1345_v20 = vrot.slane %v1344_v15, 2  ;;  %v1352_v11 = vrot.slane %v1351_v43, 2  ;;  %v1408_v24 = vpop.permute.xlu1 %1407  ;;  %v1387_v33 = vmul.f32 %v2239_v37, %v1369_v46  ;;  %v1388_v48 = vmul.f32 %v2239_v37, %v1371_v47 }
 0x233   : > { %v1301_v45 = vadd.f32 %v1300_v22, %v2300_v8  ;;  %v1185_v6 = vadd.f32 %v1183_v56, %v1138_v39  ;;  %v1229_v28 = vmul.f32 %v1221_v7, %v2032_v55  ;;  %v1230_v36 = vmul.f32 %v1228_v12, %v2039_v58 }
 0x234   : > { %v1346_v19 = vadd.f32 %v1345_v20, %v1344_v15  ;;  %v1353_v26 = vadd.f32 %v1352_v11, %v1351_v43  ;;  %v1410_v21 = vpop.permute.xlu0 %1409  ;;  %v1389_v57 = vadd.f32 %v1387_v33, %v1385_v10  ;;  %v1396_v0 = vadd.f32 %v1388_v48, %v1386_v16 }
 0x235   : > { %v1276_v8 = vmul.f32 %v1268_v49, %v2045_v60  ;;  %v1277_v32 = vmul.f32 %v1275_v38, %v2048_v61  ;;  %v1231_v43 = vadd.f32 %v1229_v28, %v1184_v51  ;;  %v1232_v13 = vadd.f32 %v1230_v36, %v1185_v6 }
 0x236   : > { %v1412_v29 = vpop.permute.xlu1 %1411  ;;  %v1390_v44 = vrot.slane %v1389_v57, 4  ;;  %v1397_v37 = vrot.slane %v1396_v0, 4  ;;  %v1347_v22 = vrot.slane %v1346_v19, 1  ;;  %v1354_v2 = vrot.slane %v1353_v26, 1 }
 0x237   : > { %v1415_v40 = vsel %vm961_vm8, %v1408_v24, %v1412_v29  ;;  %v1417_v23 = vsel %vm961_vm8, %v1412_v29, %v1408_v24  ;;  %v1302_v14 = vrot.slane %v1301_v45, 1  ;;  %v1309_v56 = vrot.slane %v1308_v9, 1 }
 0x238   : > { %v1414_v41 = vpop.permute.xlu0 %1413  ;;  %v1391_v25 = vadd.f32 %v1390_v44, %v1389_v57  ;;  %v1398_v55 = vadd.f32 %v1397_v37, %v1396_v0  ;;  %v1432_v59 = vmul.f32 %v2241_v52, %v1415_v40  ;;  %v1433_v30 = vmul.f32 %v2241_v52, %v1417_v23 }
 0x239   : > { %v1416_v58 = vsel %vm961_vm8, %v1410_v21, %v1414_v41  ;;  %v1418_v39 = vsel %vm961_vm8, %v1414_v41, %v1410_v21  ;;  %v1278_v11 = vadd.f32 %v1276_v8, %v1231_v43  ;;  %v1279_v24 = vadd.f32 %v1277_v32, %v1232_v13 }
 0x23a   : > { %v1434_v15 = vmul.f32 %v2243_v1, %v1416_v58  ;;  %v1435_v60 = vmul.f32 %v2243_v1, %v1418_v39  ;;  %v1455_v61 = vpop.permute.xlu1 %1454  ;;  %v1392_v4 = vrot.slane %v1391_v25, 2  ;;  %v1399_v18 = vrot.slane %v1398_v55, 2 }
 0x23b   : > { %v1348_v10 = vadd.f32 %v1347_v22, %v1346_v19  ;;  %v1355_v52 = vadd.f32 %v1354_v2, %v1353_v26  ;;  %v1303_v8 = vadd.f32 %v1302_v14, %v1301_v45  ;;  %v1310_v32 = vadd.f32 %v1309_v56, %v1308_v9 }
 0x23c   : > { %v1436_v46 = vadd.f32 %v1434_v15, %v1432_v59  ;;  %v1443_v47 = vadd.f32 %v1435_v60, %v1433_v30  ;;  %v1457_v7 = vpop.permute.xlu0 %1456  ;;  %v1393_v12 = vadd.f32 %v1392_v4, %v1391_v25  ;;  %v1400_v20 = vadd.f32 %v1399_v18, %v1398_v55 }
 0x23d   : > { %v1356_v22 = vmul.f32 %v1348_v10, %v2051_v62  ;;  %v1311_v58 = vadd.f32 %v1303_v8, %v1278_v11  ;;  %v1312_v39 = vadd.f32 %v1310_v32, %v1279_v24 }
 0x23e   : > { %v1437_v16 = vrot.slane %v1436_v46, 4  ;;  %v1444_v33 = vrot.slane %v1443_v47, 4  ;;  %v1459_v48 = vpop.permute.xlu1 %1458  ;;  %v1394_v1 = vrot.slane %v1393_v12, 1  ;;  %v1401_v49 = vrot.slane %v1400_v20, 1 }
 0x23f   : > { %v1462_v38 = vsel %vm1049_vm9, %v1455_v61, %v1459_v48  ;;  %v1464_v21 = vsel %vm1049_vm9, %v1459_v48, %v1455_v61  ;;  %v1358_v45 = vadd.f32 %v1356_v22, %v1311_v58 }
 0x240   : > { %v1438_v57 = vadd.f32 %v1437_v16, %v1436_v46  ;;  %v1445_v0 = vadd.f32 %v1444_v33, %v1443_v47  ;;  %v1479_v51 = vmul.f32 %v2245_v3, %v1462_v38  ;;  %v1480_v6 = vmul.f32 %v2245_v3, %v1464_v21  ;;  %v1461_v28 = vpop.permute.xlu0 %1460 }
 0x241   : > { %v1395_v19 = vadd.f32 %v1394_v1, %v1393_v12  ;;  %v1402_v26 = vadd.f32 %v1401_v49, %v1400_v20  ;;  %v1463_v36 = vsel %vm1049_vm9, %v1457_v7, %v1461_v28  ;;  %v1465_v29 = vsel %vm1049_vm9, %v1461_v28, %v1457_v7  ;;  %v1513_v28 = vld [vmem:[%s293_s30] sm:$0x3] }
 0x242   : > { %v1439_v44 = vrot.slane %v1438_v57, 2  ;;  %v1446_v37 = vrot.slane %v1445_v0, 2  ;;  %v1481_v40 = vmul.f32 %v2247_v5, %v1463_v36  ;;  %v1482_v23 = vmul.f32 %v2247_v5, %v1465_v29 }
 0x243   : > { %v1357_v3 = vmul.f32 %v1355_v52, %v2054_v63  ;;  %v1403_v34 = vmul.f32 %v1395_v19, %v2107_v17  ;;  %v1404_v59 = vmul.f32 %v1402_v26, %v2110_v27  ;;  %v1514_v26 = vunpack.c.l.bf16 %v1513_v28 }
 0x244   : > { %v1440_v2 = vadd.f32 %v1439_v44, %v1438_v57  ;;  %v1447_v41 = vadd.f32 %v1446_v37, %v1445_v0  ;;  %v1483_v25 = vadd.f32 %v1481_v40, %v1479_v51  ;;  %v1490_v55 = vadd.f32 %v1482_v23, %v1480_v6 }
 0x245   : > { %v1359_v9 = vadd.f32 %v1357_v3, %v1312_v39  ;;  %v1405_v13 = vadd.f32 %v1403_v34, %v1358_v45  ;;  %v1524_v36 = vsub.s32 2, %v1981_v31  ;;  %v1521_v29 = vrot.slane %v1514_v26, %v1986_v35 }
 0x246   : > { %v1441_v30 = vrot.slane %v1440_v2, 1  ;;  %v1448_v15 = vrot.slane %v1447_v41, 1  ;;  %v1484_v60 = vrot.slane %v1483_v25, 4  ;;  %v1491_v5 = vrot.slane %v1490_v55, 4 }
 0x247   : > { %v1406_v4 = vadd.f32 %v1404_v59, %v1359_v9  ;;  %v1525_v44 = vrot.slane %v1514_v26, %v1524_v36 }
 0x248   : > { %v1485_v61 = vadd.f32 %v1484_v60, %v1483_v25  ;;  %v1492_v62 = vadd.f32 %v1491_v5, %v1490_v55  ;;  %v1442_v43 = vadd.f32 %v1441_v30, %v1440_v2  ;;  %v1449_v63 = vadd.f32 %v1448_v15, %v1447_v41 }
 0x24a   : > { %v1486_v18 = vrot.slane %v1485_v61, 2  ;;  %v1493_v14 = vrot.slane %v1492_v62, 2  ;;  %v1450_v56 = vmul.f32 %v1442_v43, %v2119_v42  ;;  %v1451_v17 = vmul.f32 %v1449_v63, %v2122_v50 }
 0x24b   : > { %v1505_v10 = vpop.permute.xlu1 %1504 }
 0x24c   : > { %v1487_v46 = vadd.f32 %v1486_v18, %v1485_v61  ;;  %v1494_v27 = vadd.f32 %v1493_v14, %v1492_v62  ;;  %v1452_v47 = vadd.f32 %v1450_v56, %v1405_v13  ;;  %v1453_v7 = vadd.f32 %v1451_v17, %v1406_v4 }
 0x24d   : > { %v1510_v42 = vrot.slane %v1505_v10, %v1986_v35 }
 0x24e   : > { %v1488_v12 = vrot.slane %v1487_v46, 1  ;;  %v1495_v20 = vrot.slane %v1494_v27, 1 }
 0x250   : > { %v1489_v11 = vadd.f32 %v1488_v12, %v1487_v46  ;;  %v1496_v24 = vadd.f32 %v1495_v20, %v1494_v27 }
 0x252   : > { %v1497_v52 = vmul.f32 %v1489_v11, %v2134_v53  ;;  %v1498_v16 = vmul.f32 %v1496_v24, %v2137_v54 }
 0x254   : > { %v1499_v33 = vadd.f32 %v1497_v52, %v1452_v47  ;;  %v1500_v48 = vadd.f32 %v1498_v16, %v1453_v7 }
 0x256   : > { %v1511_v1 = vadd.f32 %v1510_v42, %v1499_v33  ;;  %v1512_v50 = vadd.f32 %v1510_v42, %v1500_v48 }
 0x258   : > { %v1532_v49 = vand.u32 2147483647, %v1511_v1  ;;  %v1533_v38 = vand.u32 2147483647, %v1512_v50  ;;  %v1515_v37 = vmax.f32 %v1511_v1, 0.0  ;;  %v1528_v40 = vmul.f32 %v1521_v29, %v1511_v1 }
 0x259   : > { %v1516_v23 = vmax.f32 %v1512_v50, 0.0  ;;  %v1529_v8 = vmul.f32 %v1525_v44, %v1512_v50 }
 0x25a   : > { %v1534_v21 = vsub.f32 0.0, %v1532_v49  ;;  %v1535_v57 = vsub.f32 0.0, %v1533_v38  ;;  %v1530_v3 = vsub.f32 %v1515_v37, %v1528_v40 }
 0x25b   : > { %v1531_v41 = vsub.f32 %v1516_v23, %v1529_v8 }
 0x25c   : > { %v1536_v0 = vmul.f32 1.442695, %v1534_v21  ;;  %v1538_v51 = vmul.f32 1.442695, %v1535_v57 }
 0x25e   : > { %1717 = vpow2.f32 %v1536_v0 }
 0x25f   : > { %1719 = vpow2.f32 %v1538_v51 }
 0x26b   : > { %v1718_v53 = vpop.eup %1717 }
 0x26c   : > { %v1720_v54 = vpop.eup %1719  ;;  %v1540_v6 = vadd.f32 1.0, %v1718_v53 }
 0x26d   : > { %v1541_v19 = vadd.f32 1.0, %v1720_v54 }
 0x26e   : > { %1721 = vlog2.f32 %v1540_v6 }
 0x26f   : > { %1723 = vlog2.f32 %v1541_v19 }
 0x27b   : > { %v1722_v32 = vpop.eup %1721 }
 0x27c   : > { %v1724_v22 = vpop.eup %1723  ;;  %v1543_v2 = vmul.f32 0.6931472, %v1722_v32 }
 0x27d   : > { %v1545_v25 = vmul.f32 0.6931472, %v1724_v22 }
 0x27e   : > { %v1546_v55 = vadd.f32 %v1543_v2, %v1530_v3 }
 0x27f   : > { %v1547_v58 = vadd.f32 %v1545_v25, %v1531_v41 }
 0x280   : > { %v1549_v39 = vsel %vm1548_vm10, %v1546_v55, 0.0 }
 0x281   : > { %v1550_v31 = vsel %vm1548_vm10, %v1547_v58, 0.0 }
 0x282   : > { %v1551_v34 = vadd.f32 %v1550_v31, %v1549_v39 }
 0x284   : > { %1552 = vadd.xlane.f32.xlu0 %v1551_v34 }
 0x30d   : > { %v1553_v35 = vpop.xlane.xlu0 %1552 }
 0x30e   : > { %1555 = vst.msk [vmem:[%s297_s9] sm:$0x1] %vm1554_vm11, %v1553_v35 }
 0x30f PF: > { %s19_s26 = sadd.s32 1, %s1731_s26  }
 0x310   : > { %p16_p5 = scmp.ge.s32.totalorder %s19_s26, 4  }
 0x312   :  { %18 = sbr.rel (!%p16_p5) target bundleno = 3 (0x3), region = 104 }

</bundles_post_ra>
